<compile_context>
chip_gen: v6e
topology: v6e:2x2x1
jax: 0.10.0
libtpu: 0.0.40
codegen_flags: <defaults>
</compile_context>

<pallas_src>
import jax
import jax.numpy as jnp
from jax.experimental import pallas as pl
from jax.experimental.pallas import tpu as pltpu


def _round_up(x, m):
    return (x + m - 1) // m * m


def _cdiv(a, b):
    return (a + b - 1) // b


def make_charcnn_kernel(k_max, v_sub, k_pad, t_max, t_mask_start):
    """Fused (gather + conv + masked max-pool + bias + ReLU) kernel for one N-tile."""

    def kernel(ids_ref, tw_ref, bias_ref, mask_ref, out_ref):
        # Stacked folded weights (bf16): row dk*v_sub + c holds emb[c] @ W_j[:, dk, :].T
        # for every filter bank j (zero where dk >= k_j).  Loaded once, VMEM-resident.
        w = tw_ref[...]                                            # (k_pad, F_pad) bf16

        # Lane bookkeeping, hoisted out of the t loop.  Lane dk*v_sub + c will
        # one-hot-encode "char id c at word position t+dk".  Only compares against
        # constants (no int div/mod).
        lane = jax.lax.broadcasted_iota(jnp.int32, (1, k_pad), 1)  # (1, k_pad)
        lane_lt = [lane < (dk + 1) * v_sub for dk in range(k_max - 1)]

        pooled = None
        for t in range(t_max):                    # static unroll over pool positions
            # Build the packed one-hot LHS for this pool position only (bounded
            # live range): select the group-shifted char id per lane, compare with
            # the lane index (i32 VPU work), cast to bf16 right before the MXU dot.
            id_sel = ids_ref[:, t + k_max - 1:t + k_max] + (k_max - 1) * v_sub
            for dk in range(k_max - 2, -1, -1):
                sid = ids_ref[:, t + dk:t + dk + 1]
                if dk:
                    sid = sid + dk * v_sub
                id_sel = jnp.where(lane_lt[dk], sid, id_sel)
            onehot = (id_sel == lane).astype(jnp.bfloat16)         # (TN, k_pad), exact 0/1
            # Padding lanes (>= k_max*v_sub, if any) can never match and the
            # corresponding weight rows are zero anyway.

            # One K = k_max*v_sub matmul replaces k_max vocab-padded K=128 matmuls.
            acc = jnp.dot(onehot, w, preferred_element_type=jnp.float32)   # (TN, F_pad) f32

            # Only the last (k_max - k_min) pool positions need the -1e30 window
            # mask for banks whose window would run past the word; skip elsewhere.
            if t >= t_mask_start:
                acc = acc + mask_ref[t - t_mask_start:t - t_mask_start + 1, :]

            pooled = acc if pooled is None else jnp.maximum(pooled, acc)

        # Bias + ReLU after the max-pool (equivalent: ReLU monotone, bias constant);
        # single lane-dense 128-wide f32 store.
        out_ref[...] = jnp.maximum(pooled + bias_ref[...], 0.0)

    return kernel


def char_cnn_forward(char_ids, emb_table, conv_ws, conv_bs,
                     kernel_sizes, cnn_filters, max_word_len, *, tile_n=1024):
    """Mirrors CharCNN.forward. char_ids: (batch, seq_len, max_word_len) int32."""
    batch, seq_len, word_len = char_ids.shape
    assert word_len == max_word_len
    n = batch * seq_len
    num_k = len(kernel_sizes)
    k_min, k_max = min(kernel_sizes), max(kernel_sizes)
    t_max = max_word_len - k_min + 1              # pool positions for the smallest k
    t_mask_start = max_word_len - k_max + 1       # first pool position any bank masks
    l_pad = t_max + k_max - 1                     # ids length needed by the widest window
    f_total = cnn_filters * num_k
    f_pad = _round_up(f_total, 128)               # lane-dense output width
    v = emb_table.shape[0]
    v_sub = _round_up(max(v, 2), 64)              # per-position one-hot width (>= vocab)
    k_pad = _round_up(v_sub * k_max, 128)         # packed contraction depth (256 here)

    highest = jax.lax.Precision.HIGHEST

    # Fold the (tiny) embedding table into the conv weights, stacked along the
    # packed contraction axis:
    #   tw[dk*v_sub + c, j*F + f] = sum_e emb[c, e] * W_j[f, dk, e]   (0 if dk >= k_j)
    tw = jnp.zeros((k_pad, f_pad), jnp.float32)
    bias = jnp.zeros((1, f_pad), jnp.float32)
    n_mask = max(k_max - k_min, 1)
    mask = jnp.zeros((n_mask, f_pad), jnp.float32)      # f32: -1e30 sentinel must stay f32
    for j, (w, b, k) in enumerate(zip(conv_ws, conv_bs, kernel_sizes)):
        col = j * cnn_filters
        for dk in range(k):
            contrib = jnp.dot(emb_table.astype(jnp.float32), w[:, dk, :].T,
                              precision=highest)                     # (V, F)
            tw = tw.at[dk * v_sub:dk * v_sub + v, col:col + cnn_filters].set(contrib)
        bias = bias.at[0, col:col + cnn_filters].set(b)
        t_out_j = max_word_len - k + 1
        for i in range(k_max - k_min):
            if t_mask_start + i >= t_out_j:                          # invalid pool position
                mask = mask.at[i, col:col + cnn_filters].set(-1e30)
    tw = tw.astype(jnp.bfloat16)                  # bf16 RHS for the MXU; accum stays f32

    # Tile over N = batch*seq_len.  Cap the tile so the grid has >= 2 steps
    # (both TensorCores busy on v7x); rows padded to a tile multiple and the word
    # axis padded to l_pad with PAD id 0 (dummy outputs are sliced off below).
    tn = max(8, min(tile_n, _round_up(_cdiv(n, 2), 8)))
    n_pad = _round_up(n, tn)
    ids = char_ids.reshape(n, word_len).astype(jnp.int32)
    ids = jnp.pad(ids, ((0, n_pad - n), (0, l_pad - word_len)))

    grid = (n_pad // tn,)
    kernel = make_charcnn_kernel(k_max, v_sub, k_pad, t_max, t_mask_start)

    # VMEM budget from the actual per-tile footprint: double-buffered ids/out tiles,
    # (double-buffered) resident weights/bias/mask, plus headroom for the per-t
    # packed one-hot / accumulator temporaries.  Clamped to sane bounds.
    io_bytes = 2 * (tn * _round_up(l_pad, 128) * 4          # ids tile (lane padded)
                    + tn * f_pad * 4                        # out tile
                    + k_pad * f_pad * 2                     # folded weights (bf16)
                    + 8 * f_pad * 4                         # bias
                    + _round_up(n_mask, 8) * f_pad * 4)     # mask
    scratch_bytes = tn * k_pad * (4 + 4 + 2) + 3 * tn * f_pad * 4
    vmem_limit = int(min(64 * 1024 * 1024,
                         max(4 * 1024 * 1024, 2 * (io_bytes + scratch_bytes))))

    cost = pl.CostEstimate(
        flops=2 * n_pad * t_max * k_pad * f_pad,
        transcendentals=0,
        bytes_accessed=int(ids.size * 4 + tw.size * 2 + bias.size * 4
                           + mask.size * 4 + n_pad * f_pad * 4),
    )

    out = pl.pallas_call(
        kernel,
        out_shape=jax.ShapeDtypeStruct((n_pad, f_pad), jnp.float32),
        grid_spec=pltpu.PrefetchScalarGridSpec(
            num_scalar_prefetch=0,
            grid=grid,
            in_specs=[
                pl.BlockSpec((tn, l_pad), lambda i: (i, 0)),       # char ids, tiled over N
                pl.BlockSpec((k_pad, f_pad), lambda i: (0, 0)),    # stacked folded weights
                pl.BlockSpec((1, f_pad), lambda i: (0, 0)),        # bias (resident)
                pl.BlockSpec((n_mask, f_pad), lambda i: (0, 0)),   # tail-position mask
            ],
            out_specs=pl.BlockSpec((tn, f_pad), lambda i: (i, 0)),
        ),
        compiler_params=pltpu.CompilerParams(
            dimension_semantics=("parallel",),
            vmem_limit_bytes=vmem_limit,
        ),
        cost_estimate=cost,
    )(ids, tw, bias, mask)

    return out[:n, :f_total].reshape(batch, seq_len, f_total)


def reference_forward(char_ids, emb_table, conv_ws, conv_bs,
                      kernel_sizes, cnn_filters, max_word_len):
    """Pure-JAX reference matching the PyTorch semantics (f32 throughout)."""
    batch, seq_len, word_len = char_ids.shape
    n = batch * seq_len
    emb = jnp.take(emb_table, char_ids.reshape(n, word_len), axis=0)   # (N, L, E)
    pooled_all = []
    for w, b, k in zip(conv_ws, conv_bs, kernel_sizes):
        t_out = max_word_len - k + 1
        acc = jnp.zeros((n, t_out, cnn_filters), jnp.float32)
        for dk in range(k):
            acc = acc + jnp.einsum('nte,fe->ntf', emb[:, dk:dk + t_out, :], w[:, dk, :],
                                   precision=jax.lax.Precision.HIGHEST)
        acc = acc + b[None, None, :]
        conv = jnp.maximum(acc, 0.0)
        pooled_all.append(jnp.max(conv, axis=1))
    out = jnp.concatenate(pooled_all, axis=1)
    return out.reshape(batch, seq_len, cnn_filters * len(kernel_sizes))


if __name__ == "__main__":
    # Small, CharCNN-consistent shapes.
    char_vocab_size = 50
    embedding_dim = 32
    cnn_filters = 32
    kernel_sizes = (2, 3, 4)
    max_word_len = 16

    key = jax.random.PRNGKey(0)
    k_emb, k_ids, k_ids2, *k_ws = jax.random.split(key, 3 + 2 * len(kernel_sizes))

    # Deterministic synthetic parameters (no checkpoint load).
    emb_table = 0.1 * jax.random.normal(k_emb, (char_vocab_size, embedding_dim), jnp.float32)
    emb_table = emb_table.at[0].set(0.0)   # padding_idx = 0 row zeroed, as in nn.Embedding

    conv_ws, conv_bs = [], []
    for i, ksz in enumerate(kernel_sizes):
        kw, kb = k_ws[2 * i], k_ws[2 * i + 1]
        # nn.Conv2d weight (F, 1, k, E) with in_channels=1 squeezed -> (F, k, E)
        conv_ws.append(0.1 * jax.random.normal(kw, (cnn_filters, ksz, embedding_dim), jnp.float32))
        conv_bs.append(0.1 * jax.random.normal(kb, (cnn_filters,), jnp.float32))

    out_dim = cnn_filters * len(kernel_sizes)
    # bf16 folded weights -> loosened tolerance (accumulation / pool / bias stay f32).
    ATOL, RTOL = 1e-2, 1e-2

    # Case 1: tiny shapes (still >= 2 grid steps thanks to the tile cap).
    batch, seq_len = 2, 8
    char_ids = jax.random.randint(k_ids, (batch, seq_len, max_word_len), 0, char_vocab_size,
                                  dtype=jnp.int32)
    out = jax.block_until_ready(
        char_cnn_forward(char_ids, emb_table, conv_ws, conv_bs,
                         kernel_sizes, cnn_filters, max_word_len))
    ref = reference_forward(char_ids, emb_table, conv_ws, conv_bs,
                            kernel_sizes, cnn_filters, max_word_len)
    assert out.shape == (batch, seq_len, out_dim)
    assert jnp.allclose(out, ref, atol=ATOL, rtol=RTOL)

    # Case 2: enough words to exercise row padding and a 2-step grid with a larger tile.
    batch2, seq_len2 = 3, 100
    char_ids2 = jax.random.randint(k_ids2, (batch2, seq_len2, max_word_len), 0, char_vocab_size,
                                   dtype=jnp.int32)
    out2 = jax.block_until_ready(
        char_cnn_forward(char_ids2, emb_table, conv_ws, conv_bs,
                         kernel_sizes, cnn_filters, max_word_len))
    ref2 = reference_forward(char_ids2, emb_table, conv_ws, conv_bs,
                             kernel_sizes, cnn_filters, max_word_len)
    assert out2.shape == (batch2, seq_len2, out_dim)
    assert jnp.allclose(out2, ref2, atol=ATOL, rtol=RTOL)

    print("KERNEL_OK")
</pallas_src>

<mosaic_0001>
module attributes {stable_mosaic.version = 11 : i64} {
  func.func @kernel(%arg0: i32, %arg1: memref<8x18xi32, #tpu.memory_space<vmem>>, %arg2: memref<256x128xbf16, #tpu.memory_space<vmem>>, %arg3: memref<1x128xf32, #tpu.memory_space<vmem>>, %arg4: memref<2x128xf32, #tpu.memory_space<vmem>>, %arg5: memref<8x128xf32, #tpu.memory_space<vmem>>) attributes {dimension_semantics = [#tpu.dimension_semantics<parallel>], iteration_bounds = array<i64: 2>, scalar_prefetch = 0 : i64, scratch_operands = 0 : i64, tpu.core_type = #tpu.core_type<tc>, window_params = [{transform_indices = @transform_0, window_bounds = array<i64: 8, 18>}, {pipeline_mode = #tpu.pipeline_mode<synchronous>, transform_indices = @transform_1, window_bounds = array<i64: 256, 128>}, {pipeline_mode = #tpu.pipeline_mode<synchronous>, transform_indices = @transform_2, window_bounds = array<i64: 1, 128>}, {pipeline_mode = #tpu.pipeline_mode<synchronous>, transform_indices = @transform_3, window_bounds = array<i64: 2, 128>}, {transform_indices = @transform_4, window_bounds = array<i64: 8, 128>}]} {
    %c0 = arith.constant 0 : index
    %c0_0 = arith.constant 0 : index
    %0 = vector.load %arg2[%c0, %c0_0] : memref<256x128xbf16, #tpu.memory_space<vmem>>, vector<256x128xbf16>
    %1 = tpu.iota {dimensions = array<i32: 1>} : vector<1x256xi32>
    %c64_i32 = arith.constant 64 : i32
    %2 = vector.broadcast %c64_i32 : i32 to vector<1x256xi32>
    %3 = arith.cmpi slt, %1, %2 : vector<1x256xi32>
    %c128_i32 = arith.constant 128 : i32
    %4 = vector.broadcast %c128_i32 : i32 to vector<1x256xi32>
    %5 = arith.cmpi slt, %1, %4 : vector<1x256xi32>
    %c192_i32 = arith.constant 192 : i32
    %6 = vector.broadcast %c192_i32 : i32 to vector<1x256xi32>
    %7 = arith.cmpi slt, %1, %6 : vector<1x256xi32>
    %c0_1 = arith.constant 0 : index
    %c3 = arith.constant 3 : index
    %8 = vector.load %arg1[%c0_1, %c3] : memref<8x18xi32, #tpu.memory_space<vmem>>, vector<8x1xi32>
    %c192_i32_2 = arith.constant 192 : i32
    %9 = vector.broadcast %c192_i32_2 : i32 to vector<8x1xi32>
    %10 = arith.addi %8, %9 : vector<8x1xi32>
    %c0_3 = arith.constant 0 : index
    %c2 = arith.constant 2 : index
    %11 = vector.load %arg1[%c0_3, %c2] : memref<8x18xi32, #tpu.memory_space<vmem>>, vector<8x1xi32>
    %c128_i32_4 = arith.constant 128 : i32
    %12 = vector.broadcast %c128_i32_4 : i32 to vector<8x1xi32>
    %13 = arith.addi %11, %12 : vector<8x1xi32>
    %14 = vector.shape_cast %7 : vector<1x256xi1> to vector<1x256xi1>
    %15 = vector.broadcast %14 : vector<1x256xi1> to vector<8x256xi1>
    %16 = vector.shape_cast %13 : vector<8x1xi32> to vector<8x1xi32>
    %17 = vector.broadcast %16 : vector<8x1xi32> to vector<8x256xi32>
    %18 = vector.shape_cast %10 : vector<8x1xi32> to vector<8x1xi32>
    %19 = vector.broadcast %18 : vector<8x1xi32> to vector<8x256xi32>
    %20 = arith.select %15, %17, %19 : vector<8x256xi1>, vector<8x256xi32>
    %c0_5 = arith.constant 0 : index
    %c1 = arith.constant 1 : index
    %21 = vector.load %arg1[%c0_5, %c1] : memref<8x18xi32, #tpu.memory_space<vmem>>, vector<8x1xi32>
    %c64_i32_6 = arith.constant 64 : i32
    %22 = vector.broadcast %c64_i32_6 : i32 to vector<8x1xi32>
    %23 = arith.addi %21, %22 : vector<8x1xi32>
    %24 = vector.shape_cast %5 : vector<1x256xi1> to vector<1x256xi1>
    %25 = vector.broadcast %24 : vector<1x256xi1> to vector<8x256xi1>
    %26 = vector.shape_cast %23 : vector<8x1xi32> to vector<8x1xi32>
    %27 = vector.broadcast %26 : vector<8x1xi32> to vector<8x256xi32>
    %28 = arith.select %25, %27, %20 : vector<8x256xi1>, vector<8x256xi32>
    %c0_7 = arith.constant 0 : index
    %c0_8 = arith.constant 0 : index
    %29 = vector.load %arg1[%c0_7, %c0_8] : memref<8x18xi32, #tpu.memory_space<vmem>>, vector<8x1xi32>
    %30 = vector.shape_cast %3 : vector<1x256xi1> to vector<1x256xi1>
    %31 = vector.broadcast %30 : vector<1x256xi1> to vector<8x256xi1>
    %32 = vector.shape_cast %29 : vector<8x1xi32> to vector<8x1xi32>
    %33 = vector.broadcast %32 : vector<8x1xi32> to vector<8x256xi32>
    %34 = arith.select %31, %33, %28 : vector<8x256xi1>, vector<8x256xi32>
    %35 = vector.broadcast %1 : vector<1x256xi32> to vector<8x256xi32>
    %36 = arith.cmpi eq, %34, %35 : vector<8x256xi32>
    %37 = arith.extui %36 : vector<8x256xi1> to vector<8x256xi32>
    %38 = arith.sitofp %37 : vector<8x256xi32> to vector<8x256xf32>
    %39 = arith.truncf %38 : vector<8x256xf32> to vector<8x256xbf16>
    %cst = arith.constant dense<0.000000e+00> : vector<8x128xf32>
    %40 = tpu.matmul %39, %0, %cst {dimension_numbers = #tpu.dot_dimension_numbers<[1], [0], [0], [1], [0, 0, 1, 1], [], []>} : vector<8x256xbf16>, vector<256x128xbf16>, vector<8x128xf32> -> vector<8x128xf32>
    %c0_9 = arith.constant 0 : index
    %c4 = arith.constant 4 : index
    %41 = vector.load %arg1[%c0_9, %c4] : memref<8x18xi32, #tpu.memory_space<vmem>>, vector<8x1xi32>
    %c192_i32_10 = arith.constant 192 : i32
    %42 = vector.broadcast %c192_i32_10 : i32 to vector<8x1xi32>
    %43 = arith.addi %41, %42 : vector<8x1xi32>
    %c0_11 = arith.constant 0 : index
    %c3_12 = arith.constant 3 : index
    %44 = vector.load %arg1[%c0_11, %c3_12] : memref<8x18xi32, #tpu.memory_space<vmem>>, vector<8x1xi32>
    %c128_i32_13 = arith.constant 128 : i32
    %45 = vector.broadcast %c128_i32_13 : i32 to vector<8x1xi32>
    %46 = arith.addi %44, %45 : vector<8x1xi32>
    %47 = vector.shape_cast %7 : vector<1x256xi1> to vector<1x256xi1>
    %48 = vector.broadcast %47 : vector<1x256xi1> to vector<8x256xi1>
    %49 = vector.shape_cast %46 : vector<8x1xi32> to vector<8x1xi32>
    %50 = vector.broadcast %49 : vector<8x1xi32> to vector<8x256xi32>
    %51 = vector.shape_cast %43 : vector<8x1xi32> to vector<8x1xi32>
    %52 = vector.broadcast %51 : vector<8x1xi32> to vector<8x256xi32>
    %53 = arith.select %48, %50, %52 : vector<8x256xi1>, vector<8x256xi32>
    %c0_14 = arith.constant 0 : index
    %c2_15 = arith.constant 2 : index
    %54 = vector.load %arg1[%c0_14, %c2_15] : memref<8x18xi32, #tpu.memory_space<vmem>>, vector<8x1xi32>
    %c64_i32_16 = arith.constant 64 : i32
    %55 = vector.broadcast %c64_i32_16 : i32 to vector<8x1xi32>
    %56 = arith.addi %54, %55 : vector<8x1xi32>
    %57 = vector.shape_cast %5 : vector<1x256xi1> to vector<1x256xi1>
    %58 = vector.broadcast %57 : vector<1x256xi1> to vector<8x256xi1>
    %59 = vector.shape_cast %56 : vector<8x1xi32> to vector<8x1xi32>
    %60 = vector.broadcast %59 : vector<8x1xi32> to vector<8x256xi32>
    %61 = arith.select %58, %60, %53 : vector<8x256xi1>, vector<8x256xi32>
    %c0_17 = arith.constant 0 : index
    %c1_18 = arith.constant 1 : index
    %62 = vector.load %arg1[%c0_17, %c1_18] : memref<8x18xi32, #tpu.memory_space<vmem>>, vector<8x1xi32>
    %63 = vector.shape_cast %3 : vector<1x256xi1> to vector<1x256xi1>
    %64 = vector.broadcast %63 : vector<1x256xi1> to vector<8x256xi1>
    %65 = vector.shape_cast %62 : vector<8x1xi32> to vector<8x1xi32>
    %66 = vector.broadcast %65 : vector<8x1xi32> to vector<8x256xi32>
    %67 = arith.select %64, %66, %61 : vector<8x256xi1>, vector<8x256xi32>
    %68 = vector.broadcast %1 : vector<1x256xi32> to vector<8x256xi32>
    %69 = arith.cmpi eq, %67, %68 : vector<8x256xi32>
    %70 = arith.extui %69 : vector<8x256xi1> to vector<8x256xi32>
    %71 = arith.sitofp %70 : vector<8x256xi32> to vector<8x256xf32>
    %72 = arith.truncf %71 : vector<8x256xf32> to vector<8x256xbf16>
    %cst_19 = arith.constant dense<0.000000e+00> : vector<8x128xf32>
    %73 = tpu.matmul %72, %0, %cst_19 {dimension_numbers = #tpu.dot_dimension_numbers<[1], [0], [0], [1], [0, 0, 1, 1], [], []>} : vector<8x256xbf16>, vector<256x128xbf16>, vector<8x128xf32> -> vector<8x128xf32>
    %74 = arith.maximumf %40, %73 : vector<8x128xf32>
    %c0_20 = arith.constant 0 : index
    %c5 = arith.constant 5 : index
    %75 = vector.load %arg1[%c0_20, %c5] : memref<8x18xi32, #tpu.memory_space<vmem>>, vector<8x1xi32>
    %c192_i32_21 = arith.constant 192 : i32
    %76 = vector.broadcast %c192_i32_21 : i32 to vector<8x1xi32>
    %77 = arith.addi %75, %76 : vector<8x1xi32>
    %c0_22 = arith.constant 0 : index
    %c4_23 = arith.constant 4 : index
    %78 = vector.load %arg1[%c0_22, %c4_23] : memref<8x18xi32, #tpu.memory_space<vmem>>, vector<8x1xi32>
    %c128_i32_24 = arith.constant 128 : i32
    %79 = vector.broadcast %c128_i32_24 : i32 to vector<8x1xi32>
    %80 = arith.addi %78, %79 : vector<8x1xi32>
    %81 = vector.shape_cast %7 : vector<1x256xi1> to vector<1x256xi1>
    %82 = vector.broadcast %81 : vector<1x256xi1> to vector<8x256xi1>
    %83 = vector.shape_cast %80 : vector<8x1xi32> to vector<8x1xi32>
    %84 = vector.broadcast %83 : vector<8x1xi32> to vector<8x256xi32>
    %85 = vector.shape_cast %77 : vector<8x1xi32> to vector<8x1xi32>
    %86 = vector.broadcast %85 : vector<8x1xi32> to vector<8x256xi32>
    %87 = arith.select %82, %84, %86 : vector<8x256xi1>, vector<8x256xi32>
    %c0_25 = arith.constant 0 : index
    %c3_26 = arith.constant 3 : index
    %88 = vector.load %arg1[%c0_25, %c3_26] : memref<8x18xi32, #tpu.memory_space<vmem>>, vector<8x1xi32>
    %c64_i32_27 = arith.constant 64 : i32
    %89 = vector.broadcast %c64_i32_27 : i32 to vector<8x1xi32>
    %90 = arith.addi %88, %89 : vector<8x1xi32>
    %91 = vector.shape_cast %5 : vector<1x256xi1> to vector<1x256xi1>
    %92 = vector.broadcast %91 : vector<1x256xi1> to vector<8x256xi1>
    %93 = vector.shape_cast %90 : vector<8x1xi32> to vector<8x1xi32>
    %94 = vector.broadcast %93 : vector<8x1xi32> to vector<8x256xi32>
    %95 = arith.select %92, %94, %87 : vector<8x256xi1>, vector<8x256xi32>
    %c0_28 = arith.constant 0 : index
    %c2_29 = arith.constant 2 : index
    %96 = vector.load %arg1[%c0_28, %c2_29] : memref<8x18xi32, #tpu.memory_space<vmem>>, vector<8x1xi32>
    %97 = vector.shape_cast %3 : vector<1x256xi1> to vector<1x256xi1>
    %98 = vector.broadcast %97 : vector<1x256xi1> to vector<8x256xi1>
    %99 = vector.shape_cast %96 : vector<8x1xi32> to vector<8x1xi32>
    %100 = vector.broadcast %99 : vector<8x1xi32> to vector<8x256xi32>
    %101 = arith.select %98, %100, %95 : vector<8x256xi1>, vector<8x256xi32>
    %102 = vector.broadcast %1 : vector<1x256xi32> to vector<8x256xi32>
    %103 = arith.cmpi eq, %101, %102 : vector<8x256xi32>
    %104 = arith.extui %103 : vector<8x256xi1> to vector<8x256xi32>
    %105 = arith.sitofp %104 : vector<8x256xi32> to vector<8x256xf32>
    %106 = arith.truncf %105 : vector<8x256xf32> to vector<8x256xbf16>
    %cst_30 = arith.constant dense<0.000000e+00> : vector<8x128xf32>
    %107 = tpu.matmul %106, %0, %cst_30 {dimension_numbers = #tpu.dot_dimension_numbers<[1], [0], [0], [1], [0, 0, 1, 1], [], []>} : vector<8x256xbf16>, vector<256x128xbf16>, vector<8x128xf32> -> vector<8x128xf32>
    %108 = arith.maximumf %74, %107 : vector<8x128xf32>
    %c0_31 = arith.constant 0 : index
    %c6 = arith.constant 6 : index
    %109 = vector.load %arg1[%c0_31, %c6] : memref<8x18xi32, #tpu.memory_space<vmem>>, vector<8x1xi32>
    %c192_i32_32 = arith.constant 192 : i32
    %110 = vector.broadcast %c192_i32_32 : i32 to vector<8x1xi32>
    %111 = arith.addi %109, %110 : vector<8x1xi32>
    %c0_33 = arith.constant 0 : index
    %c5_34 = arith.constant 5 : index
    %112 = vector.load %arg1[%c0_33, %c5_34] : memref<8x18xi32, #tpu.memory_space<vmem>>, vector<8x1xi32>
    %c128_i32_35 = arith.constant 128 : i32
    %113 = vector.broadcast %c128_i32_35 : i32 to vector<8x1xi32>
    %114 = arith.addi %112, %113 : vector<8x1xi32>
    %115 = vector.shape_cast %7 : vector<1x256xi1> to vector<1x256xi1>
    %116 = vector.broadcast %115 : vector<1x256xi1> to vector<8x256xi1>
    %117 = vector.shape_cast %114 : vector<8x1xi32> to vector<8x1xi32>
    %118 = vector.broadcast %117 : vector<8x1xi32> to vector<8x256xi32>
    %119 = vector.shape_cast %111 : vector<8x1xi32> to vector<8x1xi32>
    %120 = vector.broadcast %119 : vector<8x1xi32> to vector<8x256xi32>
    %121 = arith.select %116, %118, %120 : vector<8x256xi1>, vector<8x256xi32>
    %c0_36 = arith.constant 0 : index
    %c4_37 = arith.constant 4 : index
    %122 = vector.load %arg1[%c0_36, %c4_37] : memref<8x18xi32, #tpu.memory_space<vmem>>, vector<8x1xi32>
    %c64_i32_38 = arith.constant 64 : i32
    %123 = vector.broadcast %c64_i32_38 : i32 to vector<8x1xi32>
    %124 = arith.addi %122, %123 : vector<8x1xi32>
    %125 = vector.shape_cast %5 : vector<1x256xi1> to vector<1x256xi1>
    %126 = vector.broadcast %125 : vector<1x256xi1> to vector<8x256xi1>
    %127 = vector.shape_cast %124 : vector<8x1xi32> to vector<8x1xi32>
    %128 = vector.broadcast %127 : vector<8x1xi32> to vector<8x256xi32>
    %129 = arith.select %126, %128, %121 : vector<8x256xi1>, vector<8x256xi32>
    %c0_39 = arith.constant 0 : index
    %c3_40 = arith.constant 3 : index
    %130 = vector.load %arg1[%c0_39, %c3_40] : memref<8x18xi32, #tpu.memory_space<vmem>>, vector<8x1xi32>
    %131 = vector.shape_cast %3 : vector<1x256xi1> to vector<1x256xi1>
    %132 = vector.broadcast %131 : vector<1x256xi1> to vector<8x256xi1>
    %133 = vector.shape_cast %130 : vector<8x1xi32> to vector<8x1xi32>
    %134 = vector.broadcast %133 : vector<8x1xi32> to vector<8x256xi32>
    %135 = arith.select %132, %134, %129 : vector<8x256xi1>, vector<8x256xi32>
    %136 = vector.broadcast %1 : vector<1x256xi32> to vector<8x256xi32>
    %137 = arith.cmpi eq, %135, %136 : vector<8x256xi32>
    %138 = arith.extui %137 : vector<8x256xi1> to vector<8x256xi32>
    %139 = arith.sitofp %138 : vector<8x256xi32> to vector<8x256xf32>
    %140 = arith.truncf %139 : vector<8x256xf32> to vector<8x256xbf16>
    %cst_41 = arith.constant dense<0.000000e+00> : vector<8x128xf32>
    %141 = tpu.matmul %140, %0, %cst_41 {dimension_numbers = #tpu.dot_dimension_numbers<[1], [0], [0], [1], [0, 0, 1, 1], [], []>} : vector<8x256xbf16>, vector<256x128xbf16>, vector<8x128xf32> -> vector<8x128xf32>
    %142 = arith.maximumf %108, %141 : vector<8x128xf32>
    %c0_42 = arith.constant 0 : index
    %c7 = arith.constant 7 : index
    %143 = vector.load %arg1[%c0_42, %c7] : memref<8x18xi32, #tpu.memory_space<vmem>>, vector<8x1xi32>
    %c192_i32_43 = arith.constant 192 : i32
    %144 = vector.broadcast %c192_i32_43 : i32 to vector<8x1xi32>
    %145 = arith.addi %143, %144 : vector<8x1xi32>
    %c0_44 = arith.constant 0 : index
    %c6_45 = arith.constant 6 : index
    %146 = vector.load %arg1[%c0_44, %c6_45] : memref<8x18xi32, #tpu.memory_space<vmem>>, vector<8x1xi32>
    %c128_i32_46 = arith.constant 128 : i32
    %147 = vector.broadcast %c128_i32_46 : i32 to vector<8x1xi32>
    %148 = arith.addi %146, %147 : vector<8x1xi32>
    %149 = vector.shape_cast %7 : vector<1x256xi1> to vector<1x256xi1>
    %150 = vector.broadcast %149 : vector<1x256xi1> to vector<8x256xi1>
    %151 = vector.shape_cast %148 : vector<8x1xi32> to vector<8x1xi32>
    %152 = vector.broadcast %151 : vector<8x1xi32> to vector<8x256xi32>
    %153 = vector.shape_cast %145 : vector<8x1xi32> to vector<8x1xi32>
    %154 = vector.broadcast %153 : vector<8x1xi32> to vector<8x256xi32>
    %155 = arith.select %150, %152, %154 : vector<8x256xi1>, vector<8x256xi32>
    %c0_47 = arith.constant 0 : index
    %c5_48 = arith.constant 5 : index
    %156 = vector.load %arg1[%c0_47, %c5_48] : memref<8x18xi32, #tpu.memory_space<vmem>>, vector<8x1xi32>
    %c64_i32_49 = arith.constant 64 : i32
    %157 = vector.broadcast %c64_i32_49 : i32 to vector<8x1xi32>
    %158 = arith.addi %156, %157 : vector<8x1xi32>
    %159 = vector.shape_cast %5 : vector<1x256xi1> to vector<1x256xi1>
    %160 = vector.broadcast %159 : vector<1x256xi1> to vector<8x256xi1>
    %161 = vector.shape_cast %158 : vector<8x1xi32> to vector<8x1xi32>
    %162 = vector.broadcast %161 : vector<8x1xi32> to vector<8x256xi32>
    %163 = arith.select %160, %162, %155 : vector<8x256xi1>, vector<8x256xi32>
    %c0_50 = arith.constant 0 : index
    %c4_51 = arith.constant 4 : index
    %164 = vector.load %arg1[%c0_50, %c4_51] : memref<8x18xi32, #tpu.memory_space<vmem>>, vector<8x1xi32>
    %165 = vector.shape_cast %3 : vector<1x256xi1> to vector<1x256xi1>
    %166 = vector.broadcast %165 : vector<1x256xi1> to vector<8x256xi1>
    %167 = vector.shape_cast %164 : vector<8x1xi32> to vector<8x1xi32>
    %168 = vector.broadcast %167 : vector<8x1xi32> to vector<8x256xi32>
    %169 = arith.select %166, %168, %163 : vector<8x256xi1>, vector<8x256xi32>
    %170 = vector.broadcast %1 : vector<1x256xi32> to vector<8x256xi32>
    %171 = arith.cmpi eq, %169, %170 : vector<8x256xi32>
    %172 = arith.extui %171 : vector<8x256xi1> to vector<8x256xi32>
    %173 = arith.sitofp %172 : vector<8x256xi32> to vector<8x256xf32>
    %174 = arith.truncf %173 : vector<8x256xf32> to vector<8x256xbf16>
    %cst_52 = arith.constant dense<0.000000e+00> : vector<8x128xf32>
    %175 = tpu.matmul %174, %0, %cst_52 {dimension_numbers = #tpu.dot_dimension_numbers<[1], [0], [0], [1], [0, 0, 1, 1], [], []>} : vector<8x256xbf16>, vector<256x128xbf16>, vector<8x128xf32> -> vector<8x128xf32>
    %176 = arith.maximumf %142, %175 : vector<8x128xf32>
    %c0_53 = arith.constant 0 : index
    %c8 = arith.constant 8 : index
    %177 = vector.load %arg1[%c0_53, %c8] : memref<8x18xi32, #tpu.memory_space<vmem>>, vector<8x1xi32>
    %c192_i32_54 = arith.constant 192 : i32
    %178 = vector.broadcast %c192_i32_54 : i32 to vector<8x1xi32>
    %179 = arith.addi %177, %178 : vector<8x1xi32>
    %c0_55 = arith.constant 0 : index
    %c7_56 = arith.constant 7 : index
    %180 = vector.load %arg1[%c0_55, %c7_56] : memref<8x18xi32, #tpu.memory_space<vmem>>, vector<8x1xi32>
    %c128_i32_57 = arith.constant 128 : i32
    %181 = vector.broadcast %c128_i32_57 : i32 to vector<8x1xi32>
    %182 = arith.addi %180, %181 : vector<8x1xi32>
    %183 = vector.shape_cast %7 : vector<1x256xi1> to vector<1x256xi1>
    %184 = vector.broadcast %183 : vector<1x256xi1> to vector<8x256xi1>
    %185 = vector.shape_cast %182 : vector<8x1xi32> to vector<8x1xi32>
    %186 = vector.broadcast %185 : vector<8x1xi32> to vector<8x256xi32>
    %187 = vector.shape_cast %179 : vector<8x1xi32> to vector<8x1xi32>
    %188 = vector.broadcast %187 : vector<8x1xi32> to vector<8x256xi32>
    %189 = arith.select %184, %186, %188 : vector<8x256xi1>, vector<8x256xi32>
    %c0_58 = arith.constant 0 : index
    %c6_59 = arith.constant 6 : index
    %190 = vector.load %arg1[%c0_58, %c6_59] : memref<8x18xi32, #tpu.memory_space<vmem>>, vector<8x1xi32>
    %c64_i32_60 = arith.constant 64 : i32
    %191 = vector.broadcast %c64_i32_60 : i32 to vector<8x1xi32>
    %192 = arith.addi %190, %191 : vector<8x1xi32>
    %193 = vector.shape_cast %5 : vector<1x256xi1> to vector<1x256xi1>
    %194 = vector.broadcast %193 : vector<1x256xi1> to vector<8x256xi1>
    %195 = vector.shape_cast %192 : vector<8x1xi32> to vector<8x1xi32>
    %196 = vector.broadcast %195 : vector<8x1xi32> to vector<8x256xi32>
    %197 = arith.select %194, %196, %189 : vector<8x256xi1>, vector<8x256xi32>
    %c0_61 = arith.constant 0 : index
    %c5_62 = arith.constant 5 : index
    %198 = vector.load %arg1[%c0_61, %c5_62] : memref<8x18xi32, #tpu.memory_space<vmem>>, vector<8x1xi32>
    %199 = vector.shape_cast %3 : vector<1x256xi1> to vector<1x256xi1>
    %200 = vector.broadcast %199 : vector<1x256xi1> to vector<8x256xi1>
    %201 = vector.shape_cast %198 : vector<8x1xi32> to vector<8x1xi32>
    %202 = vector.broadcast %201 : vector<8x1xi32> to vector<8x256xi32>
    %203 = arith.select %200, %202, %197 : vector<8x256xi1>, vector<8x256xi32>
    %204 = vector.broadcast %1 : vector<1x256xi32> to vector<8x256xi32>
    %205 = arith.cmpi eq, %203, %204 : vector<8x256xi32>
    %206 = arith.extui %205 : vector<8x256xi1> to vector<8x256xi32>
    %207 = arith.sitofp %206 : vector<8x256xi32> to vector<8x256xf32>
    %208 = arith.truncf %207 : vector<8x256xf32> to vector<8x256xbf16>
    %cst_63 = arith.constant dense<0.000000e+00> : vector<8x128xf32>
    %209 = tpu.matmul %208, %0, %cst_63 {dimension_numbers = #tpu.dot_dimension_numbers<[1], [0], [0], [1], [0, 0, 1, 1], [], []>} : vector<8x256xbf16>, vector<256x128xbf16>, vector<8x128xf32> -> vector<8x128xf32>
    %210 = arith.maximumf %176, %209 : vector<8x128xf32>
    %c0_64 = arith.constant 0 : index
    %c9 = arith.constant 9 : index
    %211 = vector.load %arg1[%c0_64, %c9] : memref<8x18xi32, #tpu.memory_space<vmem>>, vector<8x1xi32>
    %c192_i32_65 = arith.constant 192 : i32
    %212 = vector.broadcast %c192_i32_65 : i32 to vector<8x1xi32>
    %213 = arith.addi %211, %212 : vector<8x1xi32>
    %c0_66 = arith.constant 0 : index
    %c8_67 = arith.constant 8 : index
    %214 = vector.load %arg1[%c0_66, %c8_67] : memref<8x18xi32, #tpu.memory_space<vmem>>, vector<8x1xi32>
    %c128_i32_68 = arith.constant 128 : i32
    %215 = vector.broadcast %c128_i32_68 : i32 to vector<8x1xi32>
    %216 = arith.addi %214, %215 : vector<8x1xi32>
    %217 = vector.shape_cast %7 : vector<1x256xi1> to vector<1x256xi1>
    %218 = vector.broadcast %217 : vector<1x256xi1> to vector<8x256xi1>
    %219 = vector.shape_cast %216 : vector<8x1xi32> to vector<8x1xi32>
    %220 = vector.broadcast %219 : vector<8x1xi32> to vector<8x256xi32>
    %221 = vector.shape_cast %213 : vector<8x1xi32> to vector<8x1xi32>
    %222 = vector.broadcast %221 : vector<8x1xi32> to vector<8x256xi32>
    %223 = arith.select %218, %220, %222 : vector<8x256xi1>, vector<8x256xi32>
    %c0_69 = arith.constant 0 : index
    %c7_70 = arith.constant 7 : index
    %224 = vector.load %arg1[%c0_69, %c7_70] : memref<8x18xi32, #tpu.memory_space<vmem>>, vector<8x1xi32>
    %c64_i32_71 = arith.constant 64 : i32
    %225 = vector.broadcast %c64_i32_71 : i32 to vector<8x1xi32>
    %226 = arith.addi %224, %225 : vector<8x1xi32>
    %227 = vector.shape_cast %5 : vector<1x256xi1> to vector<1x256xi1>
    %228 = vector.broadcast %227 : vector<1x256xi1> to vector<8x256xi1>
    %229 = vector.shape_cast %226 : vector<8x1xi32> to vector<8x1xi32>
    %230 = vector.broadcast %229 : vector<8x1xi32> to vector<8x256xi32>
    %231 = arith.select %228, %230, %223 : vector<8x256xi1>, vector<8x256xi32>
    %c0_72 = arith.constant 0 : index
    %c6_73 = arith.constant 6 : index
    %232 = vector.load %arg1[%c0_72, %c6_73] : memref<8x18xi32, #tpu.memory_space<vmem>>, vector<8x1xi32>
    %233 = vector.shape_cast %3 : vector<1x256xi1> to vector<1x256xi1>
    %234 = vector.broadcast %233 : vector<1x256xi1> to vector<8x256xi1>
    %235 = vector.shape_cast %232 : vector<8x1xi32> to vector<8x1xi32>
    %236 = vector.broadcast %235 : vector<8x1xi32> to vector<8x256xi32>
    %237 = arith.select %234, %236, %231 : vector<8x256xi1>, vector<8x256xi32>
    %238 = vector.broadcast %1 : vector<1x256xi32> to vector<8x256xi32>
    %239 = arith.cmpi eq, %237, %238 : vector<8x256xi32>
    %240 = arith.extui %239 : vector<8x256xi1> to vector<8x256xi32>
    %241 = arith.sitofp %240 : vector<8x256xi32> to vector<8x256xf32>
    %242 = arith.truncf %241 : vector<8x256xf32> to vector<8x256xbf16>
    %cst_74 = arith.constant dense<0.000000e+00> : vector<8x128xf32>
    %243 = tpu.matmul %242, %0, %cst_74 {dimension_numbers = #tpu.dot_dimension_numbers<[1], [0], [0], [1], [0, 0, 1, 1], [], []>} : vector<8x256xbf16>, vector<256x128xbf16>, vector<8x128xf32> -> vector<8x128xf32>
    %244 = arith.maximumf %210, %243 : vector<8x128xf32>
    %c0_75 = arith.constant 0 : index
    %c10 = arith.constant 10 : index
    %245 = vector.load %arg1[%c0_75, %c10] : memref<8x18xi32, #tpu.memory_space<vmem>>, vector<8x1xi32>
    %c192_i32_76 = arith.constant 192 : i32
    %246 = vector.broadcast %c192_i32_76 : i32 to vector<8x1xi32>
    %247 = arith.addi %245, %246 : vector<8x1xi32>
    %c0_77 = arith.constant 0 : index
    %c9_78 = arith.constant 9 : index
    %248 = vector.load %arg1[%c0_77, %c9_78] : memref<8x18xi32, #tpu.memory_space<vmem>>, vector<8x1xi32>
    %c128_i32_79 = arith.constant 128 : i32
    %249 = vector.broadcast %c128_i32_79 : i32 to vector<8x1xi32>
    %250 = arith.addi %248, %249 : vector<8x1xi32>
    %251 = vector.shape_cast %7 : vector<1x256xi1> to vector<1x256xi1>
    %252 = vector.broadcast %251 : vector<1x256xi1> to vector<8x256xi1>
    %253 = vector.shape_cast %250 : vector<8x1xi32> to vector<8x1xi32>
    %254 = vector.broadcast %253 : vector<8x1xi32> to vector<8x256xi32>
    %255 = vector.shape_cast %247 : vector<8x1xi32> to vector<8x1xi32>
    %256 = vector.broadcast %255 : vector<8x1xi32> to vector<8x256xi32>
    %257 = arith.select %252, %254, %256 : vector<8x256xi1>, vector<8x256xi32>
    %c0_80 = arith.constant 0 : index
    %c8_81 = arith.constant 8 : index
    %258 = vector.load %arg1[%c0_80, %c8_81] : memref<8x18xi32, #tpu.memory_space<vmem>>, vector<8x1xi32>
    %c64_i32_82 = arith.constant 64 : i32
    %259 = vector.broadcast %c64_i32_82 : i32 to vector<8x1xi32>
    %260 = arith.addi %258, %259 : vector<8x1xi32>
    %261 = vector.shape_cast %5 : vector<1x256xi1> to vector<1x256xi1>
    %262 = vector.broadcast %261 : vector<1x256xi1> to vector<8x256xi1>
    %263 = vector.shape_cast %260 : vector<8x1xi32> to vector<8x1xi32>
    %264 = vector.broadcast %263 : vector<8x1xi32> to vector<8x256xi32>
    %265 = arith.select %262, %264, %257 : vector<8x256xi1>, vector<8x256xi32>
    %c0_83 = arith.constant 0 : index
    %c7_84 = arith.constant 7 : index
    %266 = vector.load %arg1[%c0_83, %c7_84] : memref<8x18xi32, #tpu.memory_space<vmem>>, vector<8x1xi32>
    %267 = vector.shape_cast %3 : vector<1x256xi1> to vector<1x256xi1>
    %268 = vector.broadcast %267 : vector<1x256xi1> to vector<8x256xi1>
    %269 = vector.shape_cast %266 : vector<8x1xi32> to vector<8x1xi32>
    %270 = vector.broadcast %269 : vector<8x1xi32> to vector<8x256xi32>
    %271 = arith.select %268, %270, %265 : vector<8x256xi1>, vector<8x256xi32>
    %272 = vector.broadcast %1 : vector<1x256xi32> to vector<8x256xi32>
    %273 = arith.cmpi eq, %271, %272 : vector<8x256xi32>
    %274 = arith.extui %273 : vector<8x256xi1> to vector<8x256xi32>
    %275 = arith.sitofp %274 : vector<8x256xi32> to vector<8x256xf32>
    %276 = arith.truncf %275 : vector<8x256xf32> to vector<8x256xbf16>
    %cst_85 = arith.constant dense<0.000000e+00> : vector<8x128xf32>
    %277 = tpu.matmul %276, %0, %cst_85 {dimension_numbers = #tpu.dot_dimension_numbers<[1], [0], [0], [1], [0, 0, 1, 1], [], []>} : vector<8x256xbf16>, vector<256x128xbf16>, vector<8x128xf32> -> vector<8x128xf32>
    %278 = arith.maximumf %244, %277 : vector<8x128xf32>
    %c0_86 = arith.constant 0 : index
    %c11 = arith.constant 11 : index
    %279 = vector.load %arg1[%c0_86, %c11] : memref<8x18xi32, #tpu.memory_space<vmem>>, vector<8x1xi32>
    %c192_i32_87 = arith.constant 192 : i32
    %280 = vector.broadcast %c192_i32_87 : i32 to vector<8x1xi32>
    %281 = arith.addi %279, %280 : vector<8x1xi32>
    %c0_88 = arith.constant 0 : index
    %c10_89 = arith.constant 10 : index
    %282 = vector.load %arg1[%c0_88, %c10_89] : memref<8x18xi32, #tpu.memory_space<vmem>>, vector<8x1xi32>
    %c128_i32_90 = arith.constant 128 : i32
    %283 = vector.broadcast %c128_i32_90 : i32 to vector<8x1xi32>
    %284 = arith.addi %282, %283 : vector<8x1xi32>
    %285 = vector.shape_cast %7 : vector<1x256xi1> to vector<1x256xi1>
    %286 = vector.broadcast %285 : vector<1x256xi1> to vector<8x256xi1>
    %287 = vector.shape_cast %284 : vector<8x1xi32> to vector<8x1xi32>
    %288 = vector.broadcast %287 : vector<8x1xi32> to vector<8x256xi32>
    %289 = vector.shape_cast %281 : vector<8x1xi32> to vector<8x1xi32>
    %290 = vector.broadcast %289 : vector<8x1xi32> to vector<8x256xi32>
    %291 = arith.select %286, %288, %290 : vector<8x256xi1>, vector<8x256xi32>
    %c0_91 = arith.constant 0 : index
    %c9_92 = arith.constant 9 : index
    %292 = vector.load %arg1[%c0_91, %c9_92] : memref<8x18xi32, #tpu.memory_space<vmem>>, vector<8x1xi32>
    %c64_i32_93 = arith.constant 64 : i32
    %293 = vector.broadcast %c64_i32_93 : i32 to vector<8x1xi32>
    %294 = arith.addi %292, %293 : vector<8x1xi32>
    %295 = vector.shape_cast %5 : vector<1x256xi1> to vector<1x256xi1>
    %296 = vector.broadcast %295 : vector<1x256xi1> to vector<8x256xi1>
    %297 = vector.shape_cast %294 : vector<8x1xi32> to vector<8x1xi32>
    %298 = vector.broadcast %297 : vector<8x1xi32> to vector<8x256xi32>
    %299 = arith.select %296, %298, %291 : vector<8x256xi1>, vector<8x256xi32>
    %c0_94 = arith.constant 0 : index
    %c8_95 = arith.constant 8 : index
    %300 = vector.load %arg1[%c0_94, %c8_95] : memref<8x18xi32, #tpu.memory_space<vmem>>, vector<8x1xi32>
    %301 = vector.shape_cast %3 : vector<1x256xi1> to vector<1x256xi1>
    %302 = vector.broadcast %301 : vector<1x256xi1> to vector<8x256xi1>
    %303 = vector.shape_cast %300 : vector<8x1xi32> to vector<8x1xi32>
    %304 = vector.broadcast %303 : vector<8x1xi32> to vector<8x256xi32>
    %305 = arith.select %302, %304, %299 : vector<8x256xi1>, vector<8x256xi32>
    %306 = vector.broadcast %1 : vector<1x256xi32> to vector<8x256xi32>
    %307 = arith.cmpi eq, %305, %306 : vector<8x256xi32>
    %308 = arith.extui %307 : vector<8x256xi1> to vector<8x256xi32>
    %309 = arith.sitofp %308 : vector<8x256xi32> to vector<8x256xf32>
    %310 = arith.truncf %309 : vector<8x256xf32> to vector<8x256xbf16>
    %cst_96 = arith.constant dense<0.000000e+00> : vector<8x128xf32>
    %311 = tpu.matmul %310, %0, %cst_96 {dimension_numbers = #tpu.dot_dimension_numbers<[1], [0], [0], [1], [0, 0, 1, 1], [], []>} : vector<8x256xbf16>, vector<256x128xbf16>, vector<8x128xf32> -> vector<8x128xf32>
    %312 = arith.maximumf %278, %311 : vector<8x128xf32>
    %c0_97 = arith.constant 0 : index
    %c12 = arith.constant 12 : index
    %313 = vector.load %arg1[%c0_97, %c12] : memref<8x18xi32, #tpu.memory_space<vmem>>, vector<8x1xi32>
    %c192_i32_98 = arith.constant 192 : i32
    %314 = vector.broadcast %c192_i32_98 : i32 to vector<8x1xi32>
    %315 = arith.addi %313, %314 : vector<8x1xi32>
    %c0_99 = arith.constant 0 : index
    %c11_100 = arith.constant 11 : index
    %316 = vector.load %arg1[%c0_99, %c11_100] : memref<8x18xi32, #tpu.memory_space<vmem>>, vector<8x1xi32>
    %c128_i32_101 = arith.constant 128 : i32
    %317 = vector.broadcast %c128_i32_101 : i32 to vector<8x1xi32>
    %318 = arith.addi %316, %317 : vector<8x1xi32>
    %319 = vector.shape_cast %7 : vector<1x256xi1> to vector<1x256xi1>
    %320 = vector.broadcast %319 : vector<1x256xi1> to vector<8x256xi1>
    %321 = vector.shape_cast %318 : vector<8x1xi32> to vector<8x1xi32>
    %322 = vector.broadcast %321 : vector<8x1xi32> to vector<8x256xi32>
    %323 = vector.shape_cast %315 : vector<8x1xi32> to vector<8x1xi32>
    %324 = vector.broadcast %323 : vector<8x1xi32> to vector<8x256xi32>
    %325 = arith.select %320, %322, %324 : vector<8x256xi1>, vector<8x256xi32>
    %c0_102 = arith.constant 0 : index
    %c10_103 = arith.constant 10 : index
    %326 = vector.load %arg1[%c0_102, %c10_103] : memref<8x18xi32, #tpu.memory_space<vmem>>, vector<8x1xi32>
    %c64_i32_104 = arith.constant 64 : i32
    %327 = vector.broadcast %c64_i32_104 : i32 to vector<8x1xi32>
    %328 = arith.addi %326, %327 : vector<8x1xi32>
    %329 = vector.shape_cast %5 : vector<1x256xi1> to vector<1x256xi1>
    %330 = vector.broadcast %329 : vector<1x256xi1> to vector<8x256xi1>
    %331 = vector.shape_cast %328 : vector<8x1xi32> to vector<8x1xi32>
    %332 = vector.broadcast %331 : vector<8x1xi32> to vector<8x256xi32>
    %333 = arith.select %330, %332, %325 : vector<8x256xi1>, vector<8x256xi32>
    %c0_105 = arith.constant 0 : index
    %c9_106 = arith.constant 9 : index
    %334 = vector.load %arg1[%c0_105, %c9_106] : memref<8x18xi32, #tpu.memory_space<vmem>>, vector<8x1xi32>
    %335 = vector.shape_cast %3 : vector<1x256xi1> to vector<1x256xi1>
    %336 = vector.broadcast %335 : vector<1x256xi1> to vector<8x256xi1>
    %337 = vector.shape_cast %334 : vector<8x1xi32> to vector<8x1xi32>
    %338 = vector.broadcast %337 : vector<8x1xi32> to vector<8x256xi32>
    %339 = arith.select %336, %338, %333 : vector<8x256xi1>, vector<8x256xi32>
    %340 = vector.broadcast %1 : vector<1x256xi32> to vector<8x256xi32>
    %341 = arith.cmpi eq, %339, %340 : vector<8x256xi32>
    %342 = arith.extui %341 : vector<8x256xi1> to vector<8x256xi32>
    %343 = arith.sitofp %342 : vector<8x256xi32> to vector<8x256xf32>
    %344 = arith.truncf %343 : vector<8x256xf32> to vector<8x256xbf16>
    %cst_107 = arith.constant dense<0.000000e+00> : vector<8x128xf32>
    %345 = tpu.matmul %344, %0, %cst_107 {dimension_numbers = #tpu.dot_dimension_numbers<[1], [0], [0], [1], [0, 0, 1, 1], [], []>} : vector<8x256xbf16>, vector<256x128xbf16>, vector<8x128xf32> -> vector<8x128xf32>
    %346 = arith.maximumf %312, %345 : vector<8x128xf32>
    %c0_108 = arith.constant 0 : index
    %c13 = arith.constant 13 : index
    %347 = vector.load %arg1[%c0_108, %c13] : memref<8x18xi32, #tpu.memory_space<vmem>>, vector<8x1xi32>
    %c192_i32_109 = arith.constant 192 : i32
    %348 = vector.broadcast %c192_i32_109 : i32 to vector<8x1xi32>
    %349 = arith.addi %347, %348 : vector<8x1xi32>
    %c0_110 = arith.constant 0 : index
    %c12_111 = arith.constant 12 : index
    %350 = vector.load %arg1[%c0_110, %c12_111] : memref<8x18xi32, #tpu.memory_space<vmem>>, vector<8x1xi32>
    %c128_i32_112 = arith.constant 128 : i32
    %351 = vector.broadcast %c128_i32_112 : i32 to vector<8x1xi32>
    %352 = arith.addi %350, %351 : vector<8x1xi32>
    %353 = vector.shape_cast %7 : vector<1x256xi1> to vector<1x256xi1>
    %354 = vector.broadcast %353 : vector<1x256xi1> to vector<8x256xi1>
    %355 = vector.shape_cast %352 : vector<8x1xi32> to vector<8x1xi32>
    %356 = vector.broadcast %355 : vector<8x1xi32> to vector<8x256xi32>
    %357 = vector.shape_cast %349 : vector<8x1xi32> to vector<8x1xi32>
    %358 = vector.broadcast %357 : vector<8x1xi32> to vector<8x256xi32>
    %359 = arith.select %354, %356, %358 : vector<8x256xi1>, vector<8x256xi32>
    %c0_113 = arith.constant 0 : index
    %c11_114 = arith.constant 11 : index
    %360 = vector.load %arg1[%c0_113, %c11_114] : memref<8x18xi32, #tpu.memory_space<vmem>>, vector<8x1xi32>
    %c64_i32_115 = arith.constant 64 : i32
    %361 = vector.broadcast %c64_i32_115 : i32 to vector<8x1xi32>
    %362 = arith.addi %360, %361 : vector<8x1xi32>
    %363 = vector.shape_cast %5 : vector<1x256xi1> to vector<1x256xi1>
    %364 = vector.broadcast %363 : vector<1x256xi1> to vector<8x256xi1>
    %365 = vector.shape_cast %362 : vector<8x1xi32> to vector<8x1xi32>
    %366 = vector.broadcast %365 : vector<8x1xi32> to vector<8x256xi32>
    %367 = arith.select %364, %366, %359 : vector<8x256xi1>, vector<8x256xi32>
    %c0_116 = arith.constant 0 : index
    %c10_117 = arith.constant 10 : index
    %368 = vector.load %arg1[%c0_116, %c10_117] : memref<8x18xi32, #tpu.memory_space<vmem>>, vector<8x1xi32>
    %369 = vector.shape_cast %3 : vector<1x256xi1> to vector<1x256xi1>
    %370 = vector.broadcast %369 : vector<1x256xi1> to vector<8x256xi1>
    %371 = vector.shape_cast %368 : vector<8x1xi32> to vector<8x1xi32>
    %372 = vector.broadcast %371 : vector<8x1xi32> to vector<8x256xi32>
    %373 = arith.select %370, %372, %367 : vector<8x256xi1>, vector<8x256xi32>
    %374 = vector.broadcast %1 : vector<1x256xi32> to vector<8x256xi32>
    %375 = arith.cmpi eq, %373, %374 : vector<8x256xi32>
    %376 = arith.extui %375 : vector<8x256xi1> to vector<8x256xi32>
    %377 = arith.sitofp %376 : vector<8x256xi32> to vector<8x256xf32>
    %378 = arith.truncf %377 : vector<8x256xf32> to vector<8x256xbf16>
    %cst_118 = arith.constant dense<0.000000e+00> : vector<8x128xf32>
    %379 = tpu.matmul %378, %0, %cst_118 {dimension_numbers = #tpu.dot_dimension_numbers<[1], [0], [0], [1], [0, 0, 1, 1], [], []>} : vector<8x256xbf16>, vector<256x128xbf16>, vector<8x128xf32> -> vector<8x128xf32>
    %380 = arith.maximumf %346, %379 : vector<8x128xf32>
    %c0_119 = arith.constant 0 : index
    %c14 = arith.constant 14 : index
    %381 = vector.load %arg1[%c0_119, %c14] : memref<8x18xi32, #tpu.memory_space<vmem>>, vector<8x1xi32>
    %c192_i32_120 = arith.constant 192 : i32
    %382 = vector.broadcast %c192_i32_120 : i32 to vector<8x1xi32>
    %383 = arith.addi %381, %382 : vector<8x1xi32>
    %c0_121 = arith.constant 0 : index
    %c13_122 = arith.constant 13 : index
    %384 = vector.load %arg1[%c0_121, %c13_122] : memref<8x18xi32, #tpu.memory_space<vmem>>, vector<8x1xi32>
    %c128_i32_123 = arith.constant 128 : i32
    %385 = vector.broadcast %c128_i32_123 : i32 to vector<8x1xi32>
    %386 = arith.addi %384, %385 : vector<8x1xi32>
    %387 = vector.shape_cast %7 : vector<1x256xi1> to vector<1x256xi1>
    %388 = vector.broadcast %387 : vector<1x256xi1> to vector<8x256xi1>
    %389 = vector.shape_cast %386 : vector<8x1xi32> to vector<8x1xi32>
    %390 = vector.broadcast %389 : vector<8x1xi32> to vector<8x256xi32>
    %391 = vector.shape_cast %383 : vector<8x1xi32> to vector<8x1xi32>
    %392 = vector.broadcast %391 : vector<8x1xi32> to vector<8x256xi32>
    %393 = arith.select %388, %390, %392 : vector<8x256xi1>, vector<8x256xi32>
    %c0_124 = arith.constant 0 : index
    %c12_125 = arith.constant 12 : index
    %394 = vector.load %arg1[%c0_124, %c12_125] : memref<8x18xi32, #tpu.memory_space<vmem>>, vector<8x1xi32>
    %c64_i32_126 = arith.constant 64 : i32
    %395 = vector.broadcast %c64_i32_126 : i32 to vector<8x1xi32>
    %396 = arith.addi %394, %395 : vector<8x1xi32>
    %397 = vector.shape_cast %5 : vector<1x256xi1> to vector<1x256xi1>
    %398 = vector.broadcast %397 : vector<1x256xi1> to vector<8x256xi1>
    %399 = vector.shape_cast %396 : vector<8x1xi32> to vector<8x1xi32>
    %400 = vector.broadcast %399 : vector<8x1xi32> to vector<8x256xi32>
    %401 = arith.select %398, %400, %393 : vector<8x256xi1>, vector<8x256xi32>
    %c0_127 = arith.constant 0 : index
    %c11_128 = arith.constant 11 : index
    %402 = vector.load %arg1[%c0_127, %c11_128] : memref<8x18xi32, #tpu.memory_space<vmem>>, vector<8x1xi32>
    %403 = vector.shape_cast %3 : vector<1x256xi1> to vector<1x256xi1>
    %404 = vector.broadcast %403 : vector<1x256xi1> to vector<8x256xi1>
    %405 = vector.shape_cast %402 : vector<8x1xi32> to vector<8x1xi32>
    %406 = vector.broadcast %405 : vector<8x1xi32> to vector<8x256xi32>
    %407 = arith.select %404, %406, %401 : vector<8x256xi1>, vector<8x256xi32>
    %408 = vector.broadcast %1 : vector<1x256xi32> to vector<8x256xi32>
    %409 = arith.cmpi eq, %407, %408 : vector<8x256xi32>
    %410 = arith.extui %409 : vector<8x256xi1> to vector<8x256xi32>
    %411 = arith.sitofp %410 : vector<8x256xi32> to vector<8x256xf32>
    %412 = arith.truncf %411 : vector<8x256xf32> to vector<8x256xbf16>
    %cst_129 = arith.constant dense<0.000000e+00> : vector<8x128xf32>
    %413 = tpu.matmul %412, %0, %cst_129 {dimension_numbers = #tpu.dot_dimension_numbers<[1], [0], [0], [1], [0, 0, 1, 1], [], []>} : vector<8x256xbf16>, vector<256x128xbf16>, vector<8x128xf32> -> vector<8x128xf32>
    %414 = arith.maximumf %380, %413 : vector<8x128xf32>
    %c0_130 = arith.constant 0 : index
    %c15 = arith.constant 15 : index
    %415 = vector.load %arg1[%c0_130, %c15] : memref<8x18xi32, #tpu.memory_space<vmem>>, vector<8x1xi32>
    %c192_i32_131 = arith.constant 192 : i32
    %416 = vector.broadcast %c192_i32_131 : i32 to vector<8x1xi32>
    %417 = arith.addi %415, %416 : vector<8x1xi32>
    %c0_132 = arith.constant 0 : index
    %c14_133 = arith.constant 14 : index
    %418 = vector.load %arg1[%c0_132, %c14_133] : memref<8x18xi32, #tpu.memory_space<vmem>>, vector<8x1xi32>
    %c128_i32_134 = arith.constant 128 : i32
    %419 = vector.broadcast %c128_i32_134 : i32 to vector<8x1xi32>
    %420 = arith.addi %418, %419 : vector<8x1xi32>
    %421 = vector.shape_cast %7 : vector<1x256xi1> to vector<1x256xi1>
    %422 = vector.broadcast %421 : vector<1x256xi1> to vector<8x256xi1>
    %423 = vector.shape_cast %420 : vector<8x1xi32> to vector<8x1xi32>
    %424 = vector.broadcast %423 : vector<8x1xi32> to vector<8x256xi32>
    %425 = vector.shape_cast %417 : vector<8x1xi32> to vector<8x1xi32>
    %426 = vector.broadcast %425 : vector<8x1xi32> to vector<8x256xi32>
    %427 = arith.select %422, %424, %426 : vector<8x256xi1>, vector<8x256xi32>
    %c0_135 = arith.constant 0 : index
    %c13_136 = arith.constant 13 : index
    %428 = vector.load %arg1[%c0_135, %c13_136] : memref<8x18xi32, #tpu.memory_space<vmem>>, vector<8x1xi32>
    %c64_i32_137 = arith.constant 64 : i32
    %429 = vector.broadcast %c64_i32_137 : i32 to vector<8x1xi32>
    %430 = arith.addi %428, %429 : vector<8x1xi32>
    %431 = vector.shape_cast %5 : vector<1x256xi1> to vector<1x256xi1>
    %432 = vector.broadcast %431 : vector<1x256xi1> to vector<8x256xi1>
    %433 = vector.shape_cast %430 : vector<8x1xi32> to vector<8x1xi32>
    %434 = vector.broadcast %433 : vector<8x1xi32> to vector<8x256xi32>
    %435 = arith.select %432, %434, %427 : vector<8x256xi1>, vector<8x256xi32>
    %c0_138 = arith.constant 0 : index
    %c12_139 = arith.constant 12 : index
    %436 = vector.load %arg1[%c0_138, %c12_139] : memref<8x18xi32, #tpu.memory_space<vmem>>, vector<8x1xi32>
    %437 = vector.shape_cast %3 : vector<1x256xi1> to vector<1x256xi1>
    %438 = vector.broadcast %437 : vector<1x256xi1> to vector<8x256xi1>
    %439 = vector.shape_cast %436 : vector<8x1xi32> to vector<8x1xi32>
    %440 = vector.broadcast %439 : vector<8x1xi32> to vector<8x256xi32>
    %441 = arith.select %438, %440, %435 : vector<8x256xi1>, vector<8x256xi32>
    %442 = vector.broadcast %1 : vector<1x256xi32> to vector<8x256xi32>
    %443 = arith.cmpi eq, %441, %442 : vector<8x256xi32>
    %444 = arith.extui %443 : vector<8x256xi1> to vector<8x256xi32>
    %445 = arith.sitofp %444 : vector<8x256xi32> to vector<8x256xf32>
    %446 = arith.truncf %445 : vector<8x256xf32> to vector<8x256xbf16>
    %cst_140 = arith.constant dense<0.000000e+00> : vector<8x128xf32>
    %447 = tpu.matmul %446, %0, %cst_140 {dimension_numbers = #tpu.dot_dimension_numbers<[1], [0], [0], [1], [0, 0, 1, 1], [], []>} : vector<8x256xbf16>, vector<256x128xbf16>, vector<8x128xf32> -> vector<8x128xf32>
    %448 = arith.maximumf %414, %447 : vector<8x128xf32>
    %c0_141 = arith.constant 0 : index
    %c16 = arith.constant 16 : index
    %449 = vector.load %arg1[%c0_141, %c16] : memref<8x18xi32, #tpu.memory_space<vmem>>, vector<8x1xi32>
    %c192_i32_142 = arith.constant 192 : i32
    %450 = vector.broadcast %c192_i32_142 : i32 to vector<8x1xi32>
    %451 = arith.addi %449, %450 : vector<8x1xi32>
    %c0_143 = arith.constant 0 : index
    %c15_144 = arith.constant 15 : index
    %452 = vector.load %arg1[%c0_143, %c15_144] : memref<8x18xi32, #tpu.memory_space<vmem>>, vector<8x1xi32>
    %c128_i32_145 = arith.constant 128 : i32
    %453 = vector.broadcast %c128_i32_145 : i32 to vector<8x1xi32>
    %454 = arith.addi %452, %453 : vector<8x1xi32>
    %455 = vector.shape_cast %7 : vector<1x256xi1> to vector<1x256xi1>
    %456 = vector.broadcast %455 : vector<1x256xi1> to vector<8x256xi1>
    %457 = vector.shape_cast %454 : vector<8x1xi32> to vector<8x1xi32>
    %458 = vector.broadcast %457 : vector<8x1xi32> to vector<8x256xi32>
    %459 = vector.shape_cast %451 : vector<8x1xi32> to vector<8x1xi32>
    %460 = vector.broadcast %459 : vector<8x1xi32> to vector<8x256xi32>
    %461 = arith.select %456, %458, %460 : vector<8x256xi1>, vector<8x256xi32>
    %c0_146 = arith.constant 0 : index
    %c14_147 = arith.constant 14 : index
    %462 = vector.load %arg1[%c0_146, %c14_147] : memref<8x18xi32, #tpu.memory_space<vmem>>, vector<8x1xi32>
    %c64_i32_148 = arith.constant 64 : i32
    %463 = vector.broadcast %c64_i32_148 : i32 to vector<8x1xi32>
    %464 = arith.addi %462, %463 : vector<8x1xi32>
    %465 = vector.shape_cast %5 : vector<1x256xi1> to vector<1x256xi1>
    %466 = vector.broadcast %465 : vector<1x256xi1> to vector<8x256xi1>
    %467 = vector.shape_cast %464 : vector<8x1xi32> to vector<8x1xi32>
    %468 = vector.broadcast %467 : vector<8x1xi32> to vector<8x256xi32>
    %469 = arith.select %466, %468, %461 : vector<8x256xi1>, vector<8x256xi32>
    %c0_149 = arith.constant 0 : index
    %c13_150 = arith.constant 13 : index
    %470 = vector.load %arg1[%c0_149, %c13_150] : memref<8x18xi32, #tpu.memory_space<vmem>>, vector<8x1xi32>
    %471 = vector.shape_cast %3 : vector<1x256xi1> to vector<1x256xi1>
    %472 = vector.broadcast %471 : vector<1x256xi1> to vector<8x256xi1>
    %473 = vector.shape_cast %470 : vector<8x1xi32> to vector<8x1xi32>
    %474 = vector.broadcast %473 : vector<8x1xi32> to vector<8x256xi32>
    %475 = arith.select %472, %474, %469 : vector<8x256xi1>, vector<8x256xi32>
    %476 = vector.broadcast %1 : vector<1x256xi32> to vector<8x256xi32>
    %477 = arith.cmpi eq, %475, %476 : vector<8x256xi32>
    %478 = arith.extui %477 : vector<8x256xi1> to vector<8x256xi32>
    %479 = arith.sitofp %478 : vector<8x256xi32> to vector<8x256xf32>
    %480 = arith.truncf %479 : vector<8x256xf32> to vector<8x256xbf16>
    %cst_151 = arith.constant dense<0.000000e+00> : vector<8x128xf32>
    %481 = tpu.matmul %480, %0, %cst_151 {dimension_numbers = #tpu.dot_dimension_numbers<[1], [0], [0], [1], [0, 0, 1, 1], [], []>} : vector<8x256xbf16>, vector<256x128xbf16>, vector<8x128xf32> -> vector<8x128xf32>
    %c0_152 = arith.constant 0 : index
    %c0_153 = arith.constant 0 : index
    %482 = vector.load %arg4[%c0_152, %c0_153] : memref<2x128xf32, #tpu.memory_space<vmem>>, vector<1x128xf32>
    %483 = vector.broadcast %482 : vector<1x128xf32> to vector<8x128xf32>
    %484 = arith.addf %481, %483 : vector<8x128xf32>
    %485 = arith.maximumf %448, %484 : vector<8x128xf32>
    %c0_154 = arith.constant 0 : index
    %c17 = arith.constant 17 : index
    %486 = vector.load %arg1[%c0_154, %c17] : memref<8x18xi32, #tpu.memory_space<vmem>>, vector<8x1xi32>
    %c192_i32_155 = arith.constant 192 : i32
    %487 = vector.broadcast %c192_i32_155 : i32 to vector<8x1xi32>
    %488 = arith.addi %486, %487 : vector<8x1xi32>
    %c0_156 = arith.constant 0 : index
    %c16_157 = arith.constant 16 : index
    %489 = vector.load %arg1[%c0_156, %c16_157] : memref<8x18xi32, #tpu.memory_space<vmem>>, vector<8x1xi32>
    %c128_i32_158 = arith.constant 128 : i32
    %490 = vector.broadcast %c128_i32_158 : i32 to vector<8x1xi32>
    %491 = arith.addi %489, %490 : vector<8x1xi32>
    %492 = vector.shape_cast %7 : vector<1x256xi1> to vector<1x256xi1>
    %493 = vector.broadcast %492 : vector<1x256xi1> to vector<8x256xi1>
    %494 = vector.shape_cast %491 : vector<8x1xi32> to vector<8x1xi32>
    %495 = vector.broadcast %494 : vector<8x1xi32> to vector<8x256xi32>
    %496 = vector.shape_cast %488 : vector<8x1xi32> to vector<8x1xi32>
    %497 = vector.broadcast %496 : vector<8x1xi32> to vector<8x256xi32>
    %498 = arith.select %493, %495, %497 : vector<8x256xi1>, vector<8x256xi32>
    %c0_159 = arith.constant 0 : index
    %c15_160 = arith.constant 15 : index
    %499 = vector.load %arg1[%c0_159, %c15_160] : memref<8x18xi32, #tpu.memory_space<vmem>>, vector<8x1xi32>
    %c64_i32_161 = arith.constant 64 : i32
    %500 = vector.broadcast %c64_i32_161 : i32 to vector<8x1xi32>
    %501 = arith.addi %499, %500 : vector<8x1xi32>
    %502 = vector.shape_cast %5 : vector<1x256xi1> to vector<1x256xi1>
    %503 = vector.broadcast %502 : vector<1x256xi1> to vector<8x256xi1>
    %504 = vector.shape_cast %501 : vector<8x1xi32> to vector<8x1xi32>
    %505 = vector.broadcast %504 : vector<8x1xi32> to vector<8x256xi32>
    %506 = arith.select %503, %505, %498 : vector<8x256xi1>, vector<8x256xi32>
    %c0_162 = arith.constant 0 : index
    %c14_163 = arith.constant 14 : index
    %507 = vector.load %arg1[%c0_162, %c14_163] : memref<8x18xi32, #tpu.memory_space<vmem>>, vector<8x1xi32>
    %508 = vector.shape_cast %3 : vector<1x256xi1> to vector<1x256xi1>
    %509 = vector.broadcast %508 : vector<1x256xi1> to vector<8x256xi1>
    %510 = vector.shape_cast %507 : vector<8x1xi32> to vector<8x1xi32>
    %511 = vector.broadcast %510 : vector<8x1xi32> to vector<8x256xi32>
    %512 = arith.select %509, %511, %506 : vector<8x256xi1>, vector<8x256xi32>
    %513 = vector.broadcast %1 : vector<1x256xi32> to vector<8x256xi32>
    %514 = arith.cmpi eq, %512, %513 : vector<8x256xi32>
    %515 = arith.extui %514 : vector<8x256xi1> to vector<8x256xi32>
    %516 = arith.sitofp %515 : vector<8x256xi32> to vector<8x256xf32>
    %517 = arith.truncf %516 : vector<8x256xf32> to vector<8x256xbf16>
    %cst_164 = arith.constant dense<0.000000e+00> : vector<8x128xf32>
    %518 = tpu.matmul %517, %0, %cst_164 {dimension_numbers = #tpu.dot_dimension_numbers<[1], [0], [0], [1], [0, 0, 1, 1], [], []>} : vector<8x256xbf16>, vector<256x128xbf16>, vector<8x128xf32> -> vector<8x128xf32>
    %c1_165 = arith.constant 1 : index
    %c0_166 = arith.constant 0 : index
    %519 = vector.load %arg4[%c1_165, %c0_166] : memref<2x128xf32, #tpu.memory_space<vmem>>, vector<1x128xf32>
    %520 = vector.broadcast %519 : vector<1x128xf32> to vector<8x128xf32>
    %521 = arith.addf %518, %520 : vector<8x128xf32>
    %522 = arith.maximumf %485, %521 : vector<8x128xf32>
    %c0_167 = arith.constant 0 : index
    %c0_168 = arith.constant 0 : index
    %523 = vector.load %arg3[%c0_167, %c0_168] : memref<1x128xf32, #tpu.memory_space<vmem>>, vector<1x128xf32>
    %524 = vector.broadcast %523 : vector<1x128xf32> to vector<8x128xf32>
    %525 = arith.addf %522, %524 : vector<8x128xf32>
    %cst_169 = arith.constant 0.000000e+00 : f32
    %526 = vector.broadcast %cst_169 : f32 to vector<8x128xf32>
    %527 = arith.maximumf %525, %526 : vector<8x128xf32>
    %c0_170 = arith.constant 0 : index
    %c0_171 = arith.constant 0 : index
    %528 = vector.load %arg5[%c0_170, %c0_171] : memref<8x128xf32, #tpu.memory_space<vmem>>, vector<8x128xf32>
    tpu.vector_store %arg5[%c0_170, %c0_171], %527 {strides = array<i32>} : memref<8x128xf32, #tpu.memory_space<vmem>>, vector<8x128xf32>,
    return
  }
  func.func @transform_0(%arg0: i32) -> (i32, i32) {
    %c0_i32 = arith.constant 0 : i32
    %c0_i32_0 = arith.constant 0 : i32
    return %arg0, %c0_i32 : i32, i32
  }
  func.func @transform_1(%arg0: i32) -> (i32, i32) {
    %c0_i32 = arith.constant 0 : i32
    %c0_i32_0 = arith.constant 0 : i32
    %c0_i32_1 = arith.constant 0 : i32
    return %c0_i32, %c0_i32_0 : i32, i32
  }
  func.func @transform_2(%arg0: i32) -> (i32, i32) {
    %c0_i32 = arith.constant 0 : i32
    %c0_i32_0 = arith.constant 0 : i32
    %c0_i32_1 = arith.constant 0 : i32
    return %c0_i32, %c0_i32_0 : i32, i32
  }
  func.func @transform_3(%arg0: i32) -> (i32, i32) {
    %c0_i32 = arith.constant 0 : i32
    %c0_i32_0 = arith.constant 0 : i32
    %c0_i32_1 = arith.constant 0 : i32
    return %c0_i32, %c0_i32_0 : i32, i32
  }
  func.func @transform_4(%arg0: i32) -> (i32, i32) {
    %c0_i32 = arith.constant 0 : i32
    %c0_i32_0 = arith.constant 0 : i32
    return %arg0, %c0_i32 : i32, i32
  }
}

</mosaic_0001>

<bundles_post_ra>
// kernel: tpu_custom_call.1
= control target key start
LH: loop header
LB: loop body
LE: loop exit
PB: predicated region body
PF: predicated region fallthrough
CT: control target
= control target key end

     0   :  { %9 = vsyncpa [#allocation3], 0  ;;  %s2939_s0 = inlined_call_operand.hbm [shape: s32[16,18], index: 0, kind: input, shape index: {}]   ;;  %s2940_s1 = inlined_call_operand.hbm [shape: bf16[256,128], index: 1, kind: input, shape index: {}]   ;;  %s2941_s2 = inlined_call_operand.vmem [shape: f32[1,128], index: 2, kind: input, shape index: {}]   ;;  %s2942_s3 = inlined_call_operand.vmem [shape: f32[2,128], index: 3, kind: input, shape index: {}]   ;;  %s2943_s4 = inlined_call_operand.hbm [shape: f32[16,128], index: 4, kind: output, shape index: {}]  }
   0x1   :  { %11 = vsyncpa [#allocation3 + $0x1], 0 }
   0x2   :  { %12 = vsyncpa [#allocation6], 0 }
   0x3   :  { %13 = vsyncpa [#allocation4], 0 }
   0x4   :  { %15 = vsyncpa [#allocation4 + $0x1], 0  ;;  %s2289_s15 = smov 0   ;;  %s2291_s16 = smov 0  }
   0x5   :  { %s2293_s17 = smov 0   ;;  %s2295_s18 = smov 0  }
   0x6 LB: > { %s2310_s19 = sadd.s32 4294967295, %s2238_s18   ;;  %s1500_s20 = sadd.s32 4294967294, %s2238_s18   ;;  %s2238_s18 = sphi %s2295_s18, %s2965_s18   ;;  %s2234_s17 = sphi %s2293_s17, %s2964_s17   ;;  %s2230_s16 = sphi %s2291_s16, %s2963_s16   ;;  %s2226_s15 = sphi %s2289_s15, %s2962_s15  }
   0x7   : > { %p41_p0 = scmp.ne.s32.totalorder %s2230_s16, %s2226_s15  ;;  %p2944_p1 = scmp.eq.s32.totalorder %s2310_s19, 0 }
   0x8   : > { %p134_p3 = scmp.eq.s32.totalorder %s1500_s20, 1  ;;  %p1501_p5 = scmp.ge.s32.totalorder %s2238_s18, 1 }
   0x9   : > { %p2319_p4 = por %p2944_p1, %p41_p0  ;;  %p141_p7 = scmp.lt.s32.totalorder %s2238_s18, 3 }
   0xa   : > { %p2324_p6 = por %p134_p3, %p41_p0  ;;  %s2240_s24 = smov [#allocation5]  }
   0xb   : > { %s2948_s21 = scalar_select %p2319_p4, 1, 0 }
   0xc   : > { %s2949_s22 = scalar_select %p2324_p6, 1, 0 }
   0xd   : > { %p2329_p8 = pnand %p1501_p5, %p141_p7  ;;  %s153_s25 = sshll.u32 %s2240_s24, 4  ;;  %s154_s25 = int_to_ptr.vmem [resolvable:$true] %s153_s25 }
   0xe   : > { %s2343_s27 = sadd.s32 1, %s2238_s18   ;;  %s28_s28 = sadd.s32 1, %s2234_s17 }
   0xf   : > { %s2950_s23 = scalar_select %p2329_p8, 1, 0 }
  0x10   : > { %p1961_p9 = pneg %p2329_p8  ;;  %s25_s29 = ssub.s32 %s2238_s18, %s2343_s27 }
  0x11   : > { %s2127_s30 = scalar_lea.vmem %s154_s25, 2048  ;;  %p2135_p5 = scmp.lt.s32.totalorder %s154_s25, %s154_s25 }
  0x12   : > { %p2338_p11 = pnand %p1961_p9, %p2944_p1  ;;  %p2128_p13 = scmp.ne.s32.totalorder %s154_s25, %s2127_s30 }
  0x13   : > { %p2136_p7 = scmp.lt.s32.totalorder %s2127_s30, %s2127_s30 }
  0x14   : > { %p2118_p12 = pneg %p2338_p11 }
  0x15   : > { %p2137_p10 = por %p2136_p7, %p2135_p5 }
  0x16   : > { %p2130_p0 = pnand %p2128_p13, %p2118_p12 }
  0x18   : > { %p2131_p3 = pneg %p2130_p0 }
  0x1a   : > { %p2138_p2 = pnand %p2137_p10, %p2131_p3 }
  0x1c   : > { %2141 = shalt.err (!%p2138_p2)
}
  0x1d   : > { %s2241_s5 = smov 64   ;;  %s2242_s6 = smov 4  }
  0x1e   : > { %1964 = dma.hbm_to_vmem [thread:$0]  (!%p2338_p11), %s2940_s1, 2048, %s154_s25, [#allocation6], %s2241_s5, %s2241_s5, %s2242_s6  }
  0x1f   : > { %p26_p9 = scmp.eq.s32.totalorder %s25_s29, 0  ;;  %p35_p12 = scmp.ne.s32.totalorder %s2234_s17, %s2230_s16 }
  0x20   : > { %p36_p10 = scmp.eq.s32.totalorder %s2238_s18, 0  ;;  %p1974_p2 = scmp.lt.s32.totalorder %s2238_s18, 2 }
  0x21   : > { %s2360_s9 = scalar_select %p26_p9, %s2234_s17, %s28_s28  }
  0x22   : > { %p37_p13 = por %p36_p10, %p35_p12  ;;  %p2952_p0 = scmp.eq.s32.totalorder %s2310_s19, 1 }
  0x23   : > { %s173_s11 = sand.u32 1, %s2234_s17   ;;  %s1505_s12 = sshll.u32 %s2238_s18, 7 }
  0x24   : > { %p2364_p3 = por %p2952_p0, %p35_p12  ;;  %s1504_s13 = sshll.u32 %s173_s11, 3 }
  0x25   : > { %s2373_s24 = scalar_lea.hbm %s2939_s0, %s1505_s12  ;;  %s177_s25 = scalar_lea.vmem [#allocation2], %s1504_s13 }
  0x26   : > { %s2953_s10 = scalar_select %p2364_p3, 1, 0 }
  0x27   : > { %s184_s26 = sshll.u32 %s177_s25, 4  ;;  %p2375_p11 = pnand %p1974_p2, %p37_p13  ;;  %s185_s26 = int_to_ptr.vmem [resolvable:$true] %s184_s26 }
  0x28   : > { %s174_s29 = scalar_lea.sflag [#allocation3], %s173_s11  ;;  %s2142_s30 = scalar_lea.hbm %s2373_s24, 128 }
  0x29   : > { %p2143_p5 = scmp.ne.s32.totalorder %s2373_s24, %s2142_s30  ;;  %p2144_p7 = pneg %p2375_p11 }
  0x2a   : > { %s2147_s7 = scalar_lea.hbm %s2939_s0, 256  ;;  %p2148_p10 = scmp.lt.s32.totalorder %s2373_s24, %s2939_s0 }
  0x2b   : > { %p2145_p9 = pnand %p2144_p7, %p2143_p5  ;;  %p2149_p2 = scmp.lt.s32.totalorder %s2147_s7, %s2142_s30 }
  0x2d   : > { %p2146_p12 = pneg %p2145_p9  ;;  %p2150_p13 = por %p2149_p2, %p2148_p10 }
  0x2f   : > { %p2151_p0 = pnand %p2150_p13, %p2146_p12 }
  0x31   : > { %2154 = shalt.err (!%p2151_p0)
}
  0x32   : > { %s2155_s13 = scalar_lea.vmem %s185_s26, 128  ;;  %s2243_s11 = smov [#allocation2]  }
  0x33   : > { %p2156_p1 = scmp.ne.s32.totalorder %s185_s26, %s2155_s13  ;;  %s2160_s14 = sshll.u32 %s2243_s11, 4  ;;  %s2161_s14 = int_to_ptr.vmem [resolvable:$false] %s2160_s14 }
  0x34   : > { %s2162_s20 = scalar_lea.vmem %s2161_s14, 256  ;;  %p2163_p5 = scmp.lt.s32.totalorder %s185_s26, %s2161_s14 }
  0x35   : > { %p2158_p6 = pnand %p2156_p1, %p2144_p7  ;;  %p2164_p9 = scmp.lt.s32.totalorder %s2162_s20, %s2155_s13 }
  0x37   : > { %p2159_p3 = pneg %p2158_p6  ;;  %p2165_p4 = por %p2164_p9, %p2163_p5 }
  0x39   : > { %p2166_p8 = pnand %p2165_p4, %p2159_p3 }
  0x3b   : > { %2169 = shalt.err (!%p2166_p8)
}
  0x3c   : > { %1968 = dma.hbm_to_vmem [thread:$0]  (!%p2375_p11), %s2373_s24, 128, %s185_s26, %s174_s29  }
  0x3d   : > { %p2955_p12 = scmp.ne.s32.totalorder %s2950_s23, 0 }
  0x3e   : > { %s2396_s25 = sand.u32 (!%p2955_p12), 1, %s2230_s16   ;;  %p2956_p1 = scmp.ne.s32.totalorder (!%p2955_p12), %s2948_s21, 0 }
  0x3f   : > { %193 = sbr.rel (%p2955_p12) target bundleno = 651 (0x28b), region = 36  ;;  %s1507_s30 = sshll.u32 (!%p2955_p12), %s2396_s25, 3 }
  0x40   : > { %s196_s5 = scalar_lea.sflag (!%p2955_p12), [#allocation3], %s2396_s25  ;;  %s199_s6 = scalar_lea.vmem (!%p2955_p12), [#allocation2], %s1507_s30 }
  0x44   : > { %2213 = dma.done.wait (%p2956_p1), %s196_s5, 128  }
  0x45   : > { %2215 = vsyncadd (%p2956_p1), %s196_s5, 4294967168  ;;  %p2957_p4 = scmp.eq.s32.totalorder %s2310_s19, 0 }
  0x47   : > { %2217 = dma.done.wait (%p2957_p4), [#allocation6], 2048   ;;  %p2958_p6 = pmov %p2957_p4 }
  0x48   : > { %v2244_v0 = vmov 1   ;;  %v2245_v1 = vmov 2   ;;  %v2411_v2 = vld [vmem:[%s199_s6] sm:$0xff]  ;;  %v2437_v10 = vld [vmem:[#allocation5 + $0x68] sm:$0xff]   ;;  %v2246_v11 = vmov 0   ;;  %v2247_v12 = vmov 3  }
  0x49   : > { %2219 = vsyncadd (%p2958_p6), [#allocation6], 4294965248  ;;  %2033 = vset.pattern.permute.xlu1 %v2244_v0  ;;  %2031 = vset.pattern.permute.xlu0 %v2245_v1  ;;  %v2414_v3 = vadd.s32 64, %v2411_v2  ;;  %v2417_v4 = vadd.s32 128, %v2411_v2  ;;  %v2419_v5 = vld [vmem:[#allocation5 + $0x78] sm:$0xff]   ;;  %v2425_v7 = vld [vmem:[#allocation5 + $0x70] sm:$0xff]   ;;  %v261_v37 = vlaneseq }
  0x4a   : > { %v2421_v6 = vld [vmem:[#allocation5 + $0x38] sm:$0xff]   ;;  %v2428_v8 = vadd.s32 192, %v2411_v2  ;;  %1623 = vmatprep.subr.bf16.mxu0 %v2419_v5  ;;  %1645 = vmatprep.subr.bf16.mxu1 %v2419_v5  ;;  %v2433_v9 = vld [vmem:[#allocation5 + $0x30] sm:$0xff]   ;;  %v2446_v13 = vld [vmem:[#allocation5 + $0x28] sm:$0xff]   ;;  %v2248_v15 = vmov 4   ;;  %v2249_v22 = vmov 6  }
  0x4b   : > { %291 = vperm.xlu1 %2033, %v2414_v3   ;;  %278 = vperm.xlu0 %2031, %v2417_v4   ;;  %v2449_v14 = vld [vmem:[#allocation5 + $0x60] sm:$0xff]   ;;  %v2460_v17 = vld [vmem:[#allocation5 + $0x58] sm:$0xff]   ;;  %v2471_v19 = vld [vmem:[#allocation5 + $0x50] sm:$0xff]   ;;  %v2250_v23 = vmov 5   ;;  %v2251_v27 = vmov 8   ;;  %v2252_v28 = vmov 7  }
  0x4c   : > { %1624 = vmatpush3.bf16.msra.mxu0 %v2421_v6  ;;  %1646 = vmatpush3.bf16.msra.mxu1 %v2421_v6  ;;  %v2456_v16 = vld [vmem:[#allocation5 + $0x20] sm:$0xff]   ;;  %v2468_v18 = vld [vmem:[#allocation5 + $0x18] sm:$0xff]   ;;  %v2479_v20 = vld [vmem:[#allocation5 + $0x10] sm:$0xff]   ;;  %v2253_v29 = vmov 10   ;;  %v2254_v30 = vmov 9   ;;  %v2255_v31 = vmov 12  }
  0x4d   : > { %1625 = vmatprep.subr.bf16.mxu0 %v2425_v7  ;;  %1647 = vmatprep.subr.bf16.mxu1 %v2425_v7  ;;  %v2482_v21 = vld [vmem:[#allocation5 + $0x48] sm:$0xff]   ;;  %v2492_v25 = vld [vmem:[#allocation5 + $0x40] sm:$0xff]   ;;  %v2256_v32 = vmov 11   ;;  %v2257_v33 = vmov 14   ;;  %v2258_v34 = vmov 13   ;;  %v2259_v35 = vmov 16  }
  0x4e   : > { %v2489_v24 = vld [vmem:[#allocation5 + $0x8] sm:$0xff]   ;;  %v2499_v26 = vld [vmem:[#allocation5] sm:$0xff]   ;;  %v2260_v36 = vmov 15   ;;  %v2557_v38 = vand.u32 127, %v261_v37  ;;  %v2261_v46 = vmov 1.0|1.0  }
  0x4f   : > { %2034 = vset.pattern.permute.xlu1 %v2246_v11  ;;  %2032 = vset.pattern.permute.xlu0 %v2247_v12  ;;  %v2262_v11 = vmov 17   ;;  %s1620_s7 = sshll.u32 %s2310_s19, 7  ;;  %s227_s8 = scalar_lea.vmem [#allocation7], %s1507_s30 }
  0x50   : > { %300 = vperm.xlu1 %2034, %v2411_v2   ;;  %281 = vperm.xlu0 %2032, %v2428_v8   ;;  %v2561_v39 = vadd.s32 128, %v2557_v38  ;;  %vm264_vm0 = vcmp.lt.s32.totalorder %v2557_v38, 64  ;;  %s1420_s12 = sshll.u32 %s227_s8, 4  ;;  %s1418_s14 = scalar_lea.hbm %s2943_s4, %s1620_s7  ;;  %s1421_s12 = int_to_ptr.vmem [resolvable:$true] %s1420_s12 }
  0x51   : > { %1626 = vmatpush3.bf16.msra.mxu0 %v2433_v9  ;;  %1648 = vmatpush3.bf16.msra.mxu1 %v2433_v9  ;;  %s1407_s20 = scalar_lea.sflag [#allocation4], %s2396_s25  ;;  %s2170_s5 = scalar_lea.vmem %s1421_s12, 128 }
  0x52   : > { %1627 = vmatprep.subr.bf16.mxu0 %v2437_v10  ;;  %1649 = vmatprep.subr.bf16.mxu1 %v2437_v10  ;;  %vm269_vm1 = vcmp.lt.s32.totalorder %v2561_v39, 192  ;;  %p2171_p8 = scmp.ne.s32.totalorder %s1421_s12, %s2170_s5  ;;  %p2959_p3 = scmp.ne.s32.totalorder %s2953_s10, 0 }
  0x53   : > { %s2263_s6 = smov [#allocation7]  }
  0x54   : > { %2035 = vset.pattern.permute.xlu1 %v2247_v12  ;;  %2036 = vset.pattern.permute.xlu0 %v2248_v15  ;;  %p2172_p11 = pnand %p2171_p8, %p2959_p3  ;;  %s2174_s21 = sshll.u32 %s2263_s6, 4  ;;  %s2175_s21 = int_to_ptr.vmem [resolvable:$false] %s2174_s21 }
  0x55   : > { %449 = vperm.xlu1 %2035, %v2417_v4   ;;  %452 = vperm.xlu0 %2036, %v2428_v8   ;;  %s2176_s19 = scalar_lea.vmem %s2175_s21, 256  ;;  %p2177_p10 = scmp.lt.s32.totalorder %s1421_s12, %s2175_s21 }
  0x56   : > { %1628 = vmatpush3.bf16.msra.mxu0 %v2446_v13  ;;  %1650 = vmatpush3.bf16.msra.mxu1 %v2446_v13  ;;  %p2173_p7 = pneg %p2172_p11  ;;  %p2178_p2 = scmp.lt.s32.totalorder %s2176_s19, %s2170_s5 }
  0x57   : > { %1629 = vmatprep.subr.bf16.mxu0 %v2449_v14  ;;  %1651 = vmatprep.subr.bf16.mxu1 %v2449_v14 }
  0x58   : > { %p2179_p13 = por %p2178_p2, %p2177_p10 }
  0x59   : > { %2037 = vset.pattern.permute.xlu1 %v2245_v1  ;;  %516 = vperm.xlu0 %2036, %v2417_v4  }
  0x5a   : > { %457 = vperm.xlu1 %2037, %v2414_v3   ;;  %1630 = vmatpush3.bf16.msra.mxu0 %v2456_v16  ;;  %p2180_p0 = pnand %p2179_p13, %p2173_p7 }
  0x5b   : > { %1631 = vmatprep.subr.bf16.mxu0 %v2460_v17  ;;  %1652 = vmatpush3.bf16.msra.mxu1 %v2456_v16 }
  0x5c   : > { %1653 = vmatprep.subr.bf16.mxu1 %v2460_v17 }
  0x5d   : > { %2040 = vset.pattern.permute.xlu0 %v2247_v12 }
  0x5e   : > { %2038 = vset.pattern.permute.xlu1 %v2244_v0  ;;  %524 = vperm.xlu0 %2040, %v2414_v3  }
  0x5f   : > { %462 = vperm.xlu1 %2038, %v2411_v2   ;;  %1632 = vmatpush3.bf16.msra.mxu0 %v2468_v18 }
  0x60   : > { %1633 = vmatprep.subr.bf16.mxu0 %v2471_v19  ;;  %1654 = vmatpush3.bf16.msra.mxu1 %v2468_v18 }
  0x61   : > { %1655 = vmatprep.subr.bf16.mxu1 %v2471_v19 }
  0x62   : > { %2043 = vset.pattern.permute.xlu0 %v2249_v22 }
  0x63   : > { %2039 = vset.pattern.permute.xlu1 %v2250_v23  ;;  %586 = vperm.xlu0 %2043, %v2428_v8  }
  0x64   : > { %519 = vperm.xlu1 %2039, %v2428_v8   ;;  %1634 = vmatpush3.bf16.msra.mxu0 %v2479_v20 }
  0x65   : > { %1635 = vmatprep.subr.bf16.mxu0 %v2482_v21  ;;  %1656 = vmatpush3.bf16.msra.mxu1 %v2479_v20 }
  0x66   : > { %1657 = vmatprep.subr.bf16.mxu1 %v2482_v21 }
  0x67   : > { %650 = vperm.xlu0 %2043, %v2417_v4  }
  0x68   : > { %2041 = vset.pattern.permute.xlu1 %v2245_v1  ;;  %1636 = vmatpush3.bf16.msra.mxu0 %v2489_v24 }
  0x69   : > { %529 = vperm.xlu1 %2041, %v2411_v2   ;;  %1637 = vmatprep.subr.bf16.mxu0 %v2492_v25 }
  0x6a   : > { %1658 = vmatpush3.bf16.msra.mxu1 %v2489_v24 }
  0x6b   : > { %2047 = vset.pattern.permute.xlu0 %v2250_v23  ;;  %1659 = vmatprep.subr.bf16.mxu1 %v2492_v25 }
  0x6c   : > { %658 = vperm.xlu0 %2047, %v2414_v3   ;;  %1638 = vmatpush3.bf16.msra.mxu0 %v2499_v26 }
  0x6d   : > { %2042 = vset.pattern.permute.xlu1 %v2250_v23  ;;  %1667 = vmatprep.subr.bf16.mxu0 %v2419_v5 }
  0x6e   : > { %583 = vperm.xlu1 %2042, %v2417_v4   ;;  %1660 = vmatpush3.bf16.msra.mxu1 %v2499_v26 }
  0x6f   : > { %1689 = vmatprep.subr.bf16.mxu1 %v2419_v5 }
  0x70   : > { %2050 = vset.pattern.permute.xlu0 %v2251_v27 }
  0x71   : > { %720 = vperm.xlu0 %2050, %v2428_v8  }
  0x72   : > { %2044 = vset.pattern.permute.xlu1 %v2248_v15 }
  0x73   : > { %591 = vperm.xlu1 %2044, %v2414_v3  }
  0x75   : > { %784 = vperm.xlu0 %2050, %v2417_v4  }
  0x77   : > { %2045 = vset.pattern.permute.xlu1 %v2247_v12 }
  0x78   : > { %596 = vperm.xlu1 %2045, %v2411_v2  }
  0x79   : > { %2054 = vset.pattern.permute.xlu0 %v2252_v28 }
  0x7a   : > { %792 = vperm.xlu0 %2054, %v2414_v3  }
  0x7c   : > { %2046 = vset.pattern.permute.xlu1 %v2252_v28 }
  0x7d   : > { %653 = vperm.xlu1 %2046, %v2428_v8  }
  0x7e   : > { %2057 = vset.pattern.permute.xlu0 %v2253_v29 }
  0x7f   : > { %854 = vperm.xlu0 %2057, %v2428_v8  }
  0x81   : > { %2048 = vset.pattern.permute.xlu1 %v2248_v15 }
  0x82   : > { %663 = vperm.xlu1 %2048, %v2411_v2  }
  0x83   : > { %918 = vperm.xlu0 %2057, %v2417_v4  }
  0x86   : > { %2049 = vset.pattern.permute.xlu1 %v2252_v28 }
  0x87   : > { %717 = vperm.xlu1 %2049, %v2417_v4   ;;  %2061 = vset.pattern.permute.xlu0 %v2254_v30 }
  0x88   : > { %926 = vperm.xlu0 %2061, %v2414_v3  }
  0x8b   : > { %2051 = vset.pattern.permute.xlu1 %v2249_v22 }
  0x8c   : > { %725 = vperm.xlu1 %2051, %v2414_v3   ;;  %2064 = vset.pattern.permute.xlu0 %v2255_v31 }
  0x8d   : > { %988 = vperm.xlu0 %2064, %v2428_v8  }
  0x90   : > { %2052 = vset.pattern.permute.xlu1 %v2250_v23 }
  0x91   : > { %730 = vperm.xlu1 %2052, %v2411_v2   ;;  %1052 = vperm.xlu0 %2064, %v2417_v4  }
  0x95   : > { %2053 = vset.pattern.permute.xlu1 %v2254_v30  ;;  %2068 = vset.pattern.permute.xlu0 %v2256_v32 }
  0x96   : > { %787 = vperm.xlu1 %2053, %v2428_v8   ;;  %1060 = vperm.xlu0 %2068, %v2414_v3  }
  0x9a   : > { %2055 = vset.pattern.permute.xlu1 %v2249_v22  ;;  %2071 = vset.pattern.permute.xlu0 %v2257_v33 }
  0x9b   : > { %797 = vperm.xlu1 %2055, %v2411_v2   ;;  %1122 = vperm.xlu0 %2071, %v2428_v8  }
  0x9f   : > { %2056 = vset.pattern.permute.xlu1 %v2254_v30  ;;  %1186 = vperm.xlu0 %2071, %v2417_v4  }
  0xa0   : > { %851 = vperm.xlu1 %2056, %v2417_v4  }
  0xa3   : > { %2075 = vset.pattern.permute.xlu0 %v2258_v34 }
  0xa4   : > { %2058 = vset.pattern.permute.xlu1 %v2251_v27  ;;  %1194 = vperm.xlu0 %2075, %v2414_v3  }
  0xa5   : > { %859 = vperm.xlu1 %2058, %v2414_v3  }
  0xa8   : > { %2078 = vset.pattern.permute.xlu0 %v2259_v35 }
  0xa9   : > { %2059 = vset.pattern.permute.xlu1 %v2252_v28  ;;  %1256 = vperm.xlu0 %2078, %v2428_v8  }
  0xaa   : > { %864 = vperm.xlu1 %2059, %v2411_v2  }
  0xad   : > { %1325 = vperm.xlu0 %2078, %v2417_v4  }
  0xae   : > { %2060 = vset.pattern.permute.xlu1 %v2256_v32 }
  0xaf   : > { %921 = vperm.xlu1 %2060, %v2428_v8  }
  0xb1   : > { %2082 = vset.pattern.permute.xlu0 %v2260_v36 }
  0xb2   : > { %1333 = vperm.xlu0 %2082, %v2414_v3  }
  0xb3   : > { %2062 = vset.pattern.permute.xlu1 %v2251_v27 }
  0xb4   : > { %931 = vperm.xlu1 %2062, %v2411_v2  }
  0xb6   : > { %2084 = vset.pattern.permute.xlu0 %v2257_v33 }
  0xb8   : > { %2063 = vset.pattern.permute.xlu1 %v2256_v32 }
  0xb9   : > { %985 = vperm.xlu1 %2063, %v2417_v4  }
  0xbd   : > { %2065 = vset.pattern.permute.xlu1 %v2253_v29 }
  0xbe   : > { %993 = vperm.xlu1 %2065, %v2414_v3  }
  0xc2   : > { %2066 = vset.pattern.permute.xlu1 %v2254_v30 }
  0xc3   : > { %998 = vperm.xlu1 %2066, %v2411_v2  }
  0xc6   : > { %v279_v40 = vpop.permute.xlu0 %278  ;;  %v292_v41 = vpop.permute.xlu1 %291 }
  0xc7   : > { %2067 = vset.pattern.permute.xlu1 %v2258_v34 }
  0xc8   : > { %1055 = vperm.xlu1 %2067, %v2428_v8  }
  0xcb   : > { %v301_v42 = vpop.permute.xlu1 %300  ;;  %v282_v43 = vpop.permute.xlu0 %281 }
  0xcc   : > { %v302_v44 = vsel %vm264_vm0, %v301_v42, %v292_v41  ;;  %v284_v45 = vsel %vm269_vm1, %v279_v40, %v282_v43  ;;  %2069 = vset.pattern.permute.xlu1 %v2253_v29 }
  0xcd   : > { %vm304_vm2 = vcmp.eq.s32.totalorder %v302_v44, %v2557_v38  ;;  %vm305_vm3 = vcmp.eq.s32.totalorder %v284_v45, %v2561_v39  ;;  %1065 = vperm.xlu1 %2069, %v2411_v2  }
  0xce   : > { %vm1530_vm4 = vmpackc.low %vm304_vm2, %vm304_vm2 }
  0xcf   : > { %vm1528_vm5 = vmpackc.low %vm305_vm3, %vm305_vm3 }
  0xd0   : > { %1529 = vmatprep.mubr.msk.bf16.mxu0 %vm1528_vm5, %v2261_v46  ;;  %v450_v47 = vpop.permute.xlu1 %449  ;;  %v453_v48 = vpop.permute.xlu0 %452 }
  0xd1   : > { %1531 = vmatmul.mubr.msk.bf16.vlgmr.msra.gmra.mxu0 %vm1530_vm4, %v2261_v46  ;;  %v455_v49 = vsel %vm269_vm1, %v450_v47, %v453_v48  ;;  %2070 = vset.pattern.permute.xlu1 %v2258_v34 }
  0xd2   : > { %1668 = vmatpush3.bf16.msra.mxu0 %v2421_v6  ;;  %vm467_vm6 = vcmp.eq.s32.totalorder %v455_v49, %v2561_v39  ;;  %1119 = vperm.xlu1 %2070, %v2417_v4  }
  0xd3   : > { %1669 = vmatprep.subr.bf16.mxu0 %v2425_v7  ;;  %vm1534_vm7 = vmpackc.low %vm467_vm6, %vm467_vm6 }
  0xd4   : > { %1535 = vmatprep.mubr.msk.bf16.mxu1 %vm1534_vm7, %v2261_v46  ;;  %v517_v53 = vpop.permute.xlu0 %516 }
  0xd5   : > { %v458_v50 = vpop.permute.xlu1 %457 }
  0xd6   : > { %1670 = vmatpush3.bf16.msra.mxu0 %v2433_v9  ;;  %2072 = vset.pattern.permute.xlu1 %v2255_v31 }
  0xd7   : > { %1671 = vmatprep.subr.bf16.mxu0 %v2437_v10  ;;  %1127 = vperm.xlu1 %2072, %v2414_v3  }
  0xd9   : > { %v525_v56 = vpop.permute.xlu0 %524 }
  0xda   : > { %1672 = vmatpush3.bf16.msra.mxu0 %v2446_v13  ;;  %v463_v51 = vpop.permute.xlu1 %462 }
  0xdb   : > { %v464_v52 = vsel %vm264_vm0, %v463_v51, %v458_v50  ;;  %1673 = vmatprep.subr.bf16.mxu0 %v2449_v14  ;;  %2073 = vset.pattern.permute.xlu1 %v2256_v32 }
  0xdc   : > { %vm466_vm8 = vcmp.eq.s32.totalorder %v464_v52, %v2557_v38  ;;  %1132 = vperm.xlu1 %2073, %v2411_v2  }
  0xdd   : > { %vm1536_vm9 = vmpackc.low %vm466_vm8, %vm466_vm8 }
  0xde   : > { %1674 = vmatpush3.bf16.msra.mxu0 %v2456_v16  ;;  %1537 = vmatmul.mubr.msk.bf16.vlgmr.msra.gmra.mxu1 %vm1536_vm9, %v2261_v46  ;;  %v587_v58 = vpop.permute.xlu0 %586 }
  0xdf   : > { %1690 = vmatpush3.bf16.msra.mxu1 %v2421_v6  ;;  %1675 = vmatprep.subr.bf16.mxu0 %v2460_v17  ;;  %v520_v54 = vpop.permute.xlu1 %519 }
  0xe0   : > { %1691 = vmatprep.subr.bf16.mxu1 %v2425_v7  ;;  %v522_v55 = vsel %vm269_vm1, %v517_v53, %v520_v54  ;;  %2074 = vset.pattern.permute.xlu1 %v2260_v36 }
  0xe1   : > { %vm534_vm10 = vcmp.eq.s32.totalorder %v522_v55, %v2561_v39  ;;  %1189 = vperm.xlu1 %2074, %v2428_v8  }
  0xe2   : > { %1676 = vmatpush3.bf16.msra.mxu0 %v2468_v18  ;;  %vm1540_vm11 = vmpackc.low %vm534_vm10, %vm534_vm10  ;;  %v651_v1 = vpop.permute.xlu0 %650 }
  0xe3   : > { %1692 = vmatpush3.bf16.msra.mxu1 %v2433_v9  ;;  %1677 = vmatprep.subr.bf16.mxu0 %v2471_v19 }
  0xe4   : > { %1693 = vmatprep.subr.bf16.mxu1 %v2437_v10  ;;  %1541 = vmatprep.mubr.msk.bf16.mxu0 %vm1540_vm11, %v2261_v46  ;;  %v530_v57 = vpop.permute.xlu1 %529 }
  0xe5   : > { %2076 = vset.pattern.permute.xlu1 %v2255_v31  ;;  %v531_v59 = vsel %vm264_vm0, %v530_v57, %v525_v56 }
  0xe6   : > { %1678 = vmatpush3.bf16.msra.mxu0 %v2479_v20  ;;  %1199 = vperm.xlu1 %2076, %v2411_v2   ;;  %vm533_vm12 = vcmp.eq.s32.totalorder %v531_v59, %v2557_v38 }
  0xe7   : > { %1694 = vmatpush3.bf16.msra.mxu1 %v2446_v13  ;;  %1679 = vmatprep.subr.bf16.mxu0 %v2482_v21  ;;  %vm1542_vm15 = vmpackc.low %vm533_vm12, %vm533_vm12  ;;  %v659_v12 = vpop.permute.xlu0 %658 }
  0xe8   : > { %1695 = vmatprep.subr.bf16.mxu1 %v2449_v14 }
  0xe9   : > { %v584_v60 = vpop.permute.xlu1 %583 }
  0xea   : > { %1680 = vmatpush3.bf16.msra.mxu0 %v2489_v24  ;;  %v589_v61 = vsel %vm269_vm1, %v584_v60, %v587_v58  ;;  %2077 = vset.pattern.permute.xlu1 %v2260_v36 }
  0xeb   : > { %1696 = vmatpush3.bf16.msra.mxu1 %v2456_v16  ;;  %1681 = vmatprep.subr.bf16.mxu0 %v2492_v25  ;;  %vm601_vm13 = vcmp.eq.s32.totalorder %v589_v61, %v2561_v39 }
  0xec   : > { %1697 = vmatprep.subr.bf16.mxu1 %v2460_v17  ;;  %vm1546_vm14 = vmpackc.low %vm601_vm13, %vm601_vm13  ;;  %1253 = vperm.xlu1 %2077, %v2417_v4   ;;  %v721_v22 = vpop.permute.xlu0 %720 }
  0xed   : > { %1547 = vmatprep.mubr.msk.bf16.mxu1 %vm1546_vm14, %v2261_v46 }
  0xee   : > { %1682 = vmatpush3.bf16.msra.mxu0 %v2499_v26  ;;  %v592_v62 = vpop.permute.xlu1 %591 }
  0xef   : > { %1698 = vmatpush3.bf16.msra.mxu1 %v2468_v18  ;;  %1711 = vmatprep.subr.bf16.mxu0 %v2419_v5 }
  0xf0   : > { %1699 = vmatprep.subr.bf16.mxu1 %v2471_v19  ;;  %2079 = vset.pattern.permute.xlu1 %v2257_v33  ;;  %v785_v29 = vpop.permute.xlu0 %784 }
  0xf1   : > { %1543 = vmatmul.mubr.msk.bf16.vlgmr.msra.gmra.mxu0 %vm1542_vm15, %v2261_v46  ;;  %1261 = vperm.xlu1 %2079, %v2414_v3  }
  0xf2   : > { %1712 = vmatpush3.bf16.msra.mxu0 %v2421_v6 }
  0xf3   : > { %1700 = vmatpush3.bf16.msra.mxu1 %v2479_v20  ;;  %1713 = vmatprep.subr.bf16.mxu0 %v2425_v7  ;;  %v597_v63 = vpop.permute.xlu1 %596 }
  0xf4   : > { %1701 = vmatprep.subr.bf16.mxu1 %v2482_v21  ;;  %v598_v0 = vsel %vm264_vm0, %v597_v63, %v592_v62 }
  0xf5   : > { %2080 = vset.pattern.permute.xlu1 %v2258_v34  ;;  %vm600_vm2 = vcmp.eq.s32.totalorder %v598_v0, %v2557_v38 }
  0xf6   : > { %1714 = vmatpush3.bf16.msra.mxu0 %v2433_v9  ;;  %1266 = vperm.xlu1 %2080, %v2411_v2   ;;  %vm1548_vm3 = vmpackc.low %vm600_vm2, %vm600_vm2 }
  0xf7   : > { %1702 = vmatpush3.bf16.msra.mxu1 %v2489_v24  ;;  %1715 = vmatprep.subr.bf16.mxu0 %v2437_v10 }
  0xf8   : > { %1703 = vmatprep.subr.bf16.mxu1 %v2492_v25  ;;  %v654_v3 = vpop.permute.xlu1 %653 }
  0xf9   : > { %v656_v4 = vsel %vm269_vm1, %v651_v1, %v654_v3 }
  0xfa   : > { %1716 = vmatpush3.bf16.msra.mxu0 %v2446_v13  ;;  %vm668_vm4 = vcmp.eq.s32.totalorder %v656_v4, %v2561_v39  ;;  %2081 = vset.pattern.permute.xlu1 %v2262_v11 }
  0xfb   : > { %1704 = vmatpush3.bf16.msra.mxu1 %v2499_v26  ;;  %1717 = vmatprep.subr.bf16.mxu0 %v2449_v14  ;;  %vm1552_vm5 = vmpackc.low %vm668_vm4, %vm668_vm4 }
  0xfc   : > { %1733 = vmatprep.subr.bf16.mxu1 %v2419_v5  ;;  %1553 = vmatprep.mubr.msk.bf16.mxu0 %vm1552_vm5, %v2261_v46 }
  0xfd   : > { %1328 = vperm.xlu1 %2081, %v2428_v8   ;;  %v664_v15 = vpop.permute.xlu1 %663 }
  0xfe   : > { %1718 = vmatpush3.bf16.msra.mxu0 %v2456_v16  ;;  %1549 = vmatmul.mubr.msk.bf16.vlgmr.msra.gmra.mxu1 %vm1548_vm3, %v2261_v46  ;;  %v665_v27 = vsel %vm264_vm0, %v664_v15, %v659_v12 }
  0xff   : > { %1734 = vmatpush3.bf16.msra.mxu1 %v2421_v6  ;;  %1719 = vmatprep.subr.bf16.mxu0 %v2460_v17  ;;  %vm667_vm8 = vcmp.eq.s32.totalorder %v665_v27, %v2557_v38 }
 0x100   : > { %1735 = vmatprep.subr.bf16.mxu1 %v2425_v7  ;;  %vm1554_vm9 = vmpackc.low %vm667_vm8, %vm667_vm8 }
 0x101   : > { %2083 = vset.pattern.permute.xlu1 %v2257_v33  ;;  %v793_v33 = vpop.permute.xlu0 %792 }
 0x102   : > { %1720 = vmatpush3.bf16.msra.mxu0 %v2468_v18  ;;  %v718_v23 = vpop.permute.xlu1 %717  ;;  %1338 = vperm.xlu1 %2083, %v2411_v2  }
 0x103   : > { %1736 = vmatpush3.bf16.msra.mxu1 %v2433_v9  ;;  %1721 = vmatprep.subr.bf16.mxu0 %v2471_v19  ;;  %v723_v8 = vsel %vm269_vm1, %v718_v23, %v721_v22  ;;  %v2101_v22 = vld [vmem:[#allocation5 + $0x38] sm:$0xff]  }
 0x104   : > { %1737 = vmatprep.subr.bf16.mxu1 %v2437_v10  ;;  %vm735_vm6 = vcmp.eq.s32.totalorder %v723_v8, %v2561_v39 }
 0x105   : > { %vm1558_vm7 = vmpackc.low %vm735_vm6, %vm735_vm6  ;;  %v855_v35 = vpop.permute.xlu0 %854 }
 0x106   : > { %1722 = vmatpush3.bf16.msra.mxu0 %v2479_v20  ;;  %1559 = vmatprep.mubr.msk.bf16.mxu1 %vm1558_vm7, %v2261_v46 }
 0x107   : > { %1738 = vmatpush3.bf16.msra.mxu1 %v2446_v13  ;;  %1723 = vmatprep.subr.bf16.mxu0 %v2482_v21  ;;  %v726_v2 = vpop.permute.xlu1 %725 }
 0x108   : > { %1739 = vmatprep.subr.bf16.mxu1 %v2449_v14 }
 0x109   : > { %v919_v43 = vpop.permute.xlu0 %918 }
 0x10a   : > { %1724 = vmatpush3.bf16.msra.mxu0 %v2489_v24 }
 0x10b   : > { %1740 = vmatpush3.bf16.msra.mxu1 %v2456_v16  ;;  %1725 = vmatprep.subr.bf16.mxu0 %v2492_v25 }
 0x10c   : > { %1741 = vmatprep.subr.bf16.mxu1 %v2460_v17  ;;  %v731_v28 = vpop.permute.xlu1 %730 }
 0x10d   : > { %v732_v32 = vsel %vm264_vm0, %v731_v28, %v726_v2  ;;  %v927_v47 = vpop.permute.xlu0 %926 }
 0x10e   : > { %1726 = vmatpush3.bf16.msra.mxu0 %v2499_v26  ;;  %vm734_vm12 = vcmp.eq.s32.totalorder %v732_v32, %v2557_v38 }
 0x10f   : > { %1742 = vmatpush3.bf16.msra.mxu1 %v2468_v18  ;;  %1755 = vmatprep.subr.bf16.mxu0 %v2419_v5  ;;  %vm1560_vm13 = vmpackc.low %vm734_vm12, %vm734_vm12 }
 0x110   : > { %1743 = vmatprep.subr.bf16.mxu1 %v2471_v19 }
 0x111   : > { %1555 = vmatmul.mubr.msk.bf16.vlgmr.msra.gmra.mxu0 %vm1554_vm9, %v2261_v46  ;;  %v788_v30 = vpop.permute.xlu1 %787  ;;  %v989_v49 = vpop.permute.xlu0 %988 }
 0x112   : > { %1756 = vmatpush3.bf16.msra.mxu0 %v2421_v6  ;;  %v790_v31 = vsel %vm269_vm1, %v785_v29, %v788_v30  ;;  %v2104_v29 = vld [vmem:[#allocation5 + $0x30] sm:$0xff]   ;;  %v2105_v30 = vld [vmem:[#allocation5 + $0x68] sm:$0xff]  }
 0x113   : > { %1744 = vmatpush3.bf16.msra.mxu1 %v2479_v20  ;;  %1757 = vmatprep.subr.bf16.mxu0 %v2425_v7  ;;  %vm802_vm10 = vcmp.eq.s32.totalorder %v790_v31, %v2561_v39 }
 0x114   : > { %1745 = vmatprep.subr.bf16.mxu1 %v2482_v21  ;;  %vm1564_vm11 = vmpackc.low %vm802_vm10, %vm802_vm10 }
 0x115   : > { %1565 = vmatprep.mubr.msk.bf16.mxu0 %vm1564_vm11, %v2261_v46  ;;  %v1053_v56 = vpop.permute.xlu0 %1052 }
 0x116   : > { %1758 = vmatpush3.bf16.msra.mxu0 %v2433_v9  ;;  %v798_v34 = vpop.permute.xlu1 %797 }
 0x117   : > { %1746 = vmatpush3.bf16.msra.mxu1 %v2489_v24  ;;  %1759 = vmatprep.subr.bf16.mxu0 %v2437_v10  ;;  %v799_v42 = vsel %vm264_vm0, %v798_v34, %v793_v33 }
 0x118   : > { %1747 = vmatprep.subr.bf16.mxu1 %v2492_v25  ;;  %vm801_vm2 = vcmp.eq.s32.totalorder %v799_v42, %v2557_v38  ;;  %v2111_v42 = vld [vmem:[#allocation5 + $0x50] sm:$0xff]  }
 0x119   : > { %vm1566_vm4 = vmpackc.low %vm801_vm2, %vm801_vm2  ;;  %v1061_v59 = vpop.permute.xlu0 %1060 }
 0x11a   : > { %1760 = vmatpush3.bf16.msra.mxu0 %v2446_v13 }
 0x11b   : > { %1748 = vmatpush3.bf16.msra.mxu1 %v2499_v26  ;;  %1761 = vmatprep.subr.bf16.mxu0 %v2449_v14  ;;  %v852_v36 = vpop.permute.xlu1 %851 }
 0x11c   : > { %1777 = vmatprep.subr.bf16.mxu1 %v2419_v5  ;;  %v857_v37 = vsel %vm269_vm1, %v852_v36, %v855_v35  ;;  %v2109_v36 = vld [vmem:[#allocation5 + $0x58] sm:$0xff]  }
 0x11d   : > { %vm869_vm14 = vcmp.eq.s32.totalorder %v857_v37, %v2561_v39  ;;  %v1123_v61 = vpop.permute.xlu0 %1122 }
 0x11e   : > { %1762 = vmatpush3.bf16.msra.mxu0 %v2456_v16  ;;  %1561 = vmatmul.mubr.msk.bf16.vlgmr.msra.gmra.mxu1 %vm1560_vm13, %v2261_v46  ;;  %vm1570_vm15 = vmpackc.low %vm869_vm14, %vm869_vm14 }
 0x11f   : > { %1778 = vmatpush3.bf16.msra.mxu1 %v2421_v6  ;;  %1763 = vmatprep.subr.bf16.mxu0 %v2460_v17 }
 0x120   : > { %1779 = vmatprep.subr.bf16.mxu1 %v2425_v7  ;;  %v860_v40 = vpop.permute.xlu1 %859  ;;  %1571 = vmatprep.mubr.msk.bf16.mxu1 %vm1570_vm15, %v2261_v46 }
 0x121   : > { %v1187_v11 = vpop.permute.xlu0 %1186 }
 0x122   : > { %1764 = vmatpush3.bf16.msra.mxu0 %v2468_v18 }
 0x123   : > { %1780 = vmatpush3.bf16.msra.mxu1 %v2433_v9  ;;  %1765 = vmatprep.subr.bf16.mxu0 %v2471_v19 }
 0x124   : > { %1781 = vmatprep.subr.bf16.mxu1 %v2437_v10 }
 0x125   : > { %v865_v41 = vpop.permute.xlu1 %864  ;;  %v1195_v15 = vpop.permute.xlu0 %1194 }
 0x126   : > { %1766 = vmatpush3.bf16.msra.mxu0 %v2479_v20  ;;  %v866_v50 = vsel %vm264_vm0, %v865_v41, %v860_v40  ;;  %v2110_v40 = vld [vmem:[#allocation5 + $0x18] sm:$0xff]  }
 0x127   : > { %1782 = vmatpush3.bf16.msra.mxu1 %v2446_v13  ;;  %1767 = vmatprep.subr.bf16.mxu0 %v2482_v21  ;;  %vm868_vm6 = vcmp.eq.s32.totalorder %v866_v50, %v2557_v38  ;;  %v2114_v50 = vld [vmem:[#allocation5 + $0x8] sm:$0xff]  }
 0x128   : > { %1783 = vmatprep.subr.bf16.mxu1 %v2449_v14  ;;  %vm1572_vm8 = vmpackc.low %vm868_vm6, %vm868_vm6 }
 0x129   : > { %v1257_v8 = vpop.permute.xlu0 %1256 }
 0x12a   : > { %1768 = vmatpush3.bf16.msra.mxu0 %v2489_v24  ;;  %v922_v44 = vpop.permute.xlu1 %921 }
 0x12b   : > { %1784 = vmatpush3.bf16.msra.mxu1 %v2456_v16  ;;  %1769 = vmatprep.subr.bf16.mxu0 %v2492_v25  ;;  %v924_v45 = vsel %vm269_vm1, %v919_v43, %v922_v44 }
 0x12c   : > { %1785 = vmatprep.subr.bf16.mxu1 %v2460_v17  ;;  %vm936_vm3 = vcmp.eq.s32.totalorder %v924_v45, %v2561_v39 }
 0x12d   : > { %vm1576_vm5 = vmpackc.low %vm936_vm3, %vm936_vm3  ;;  %v1326_v32 = vpop.permute.xlu0 %1325 }
 0x12e   : > { %1770 = vmatpush3.bf16.msra.mxu0 %v2499_v26 }
 0x12f   : > { %1786 = vmatpush3.bf16.msra.mxu1 %v2468_v18  ;;  %1799 = vmatprep.subr.bf16.mxu0 %v2419_v5  ;;  %v932_v48 = vpop.permute.xlu1 %931 }
 0x130   : > { %1787 = vmatprep.subr.bf16.mxu1 %v2471_v19  ;;  %v933_v57 = vsel %vm264_vm0, %v932_v48, %v927_v47  ;;  %v2112_v47 = vld [vmem:[#allocation5 + $0x10] sm:$0xff]   ;;  %v2113_v48 = vld [vmem:[#allocation5 + $0x48] sm:$0xff]  }
 0x131   : > { %1567 = vmatmul.mubr.msk.bf16.vlgmr.msra.gmra.mxu0 %vm1566_vm4, %v2261_v46  ;;  %vm935_vm10 = vcmp.eq.s32.totalorder %v933_v57, %v2557_v38  ;;  %v1334_v45 = vpop.permute.xlu0 %1333 }
 0x132   : > { %1800 = vmatpush3.bf16.msra.mxu0 %v2421_v6  ;;  %1577 = vmatprep.mubr.msk.bf16.mxu0 %vm1576_vm5, %v2261_v46  ;;  %vm1578_vm12 = vmpackc.low %vm935_vm10, %vm935_vm10 }
 0x133   : > { %1788 = vmatpush3.bf16.msra.mxu1 %v2479_v20  ;;  %1801 = vmatprep.subr.bf16.mxu0 %v2425_v7 }
 0x134   : > { %1789 = vmatprep.subr.bf16.mxu1 %v2482_v21  ;;  %v986_v51 = vpop.permute.xlu1 %985 }
 0x135   : > { %v991_v52 = vsel %vm269_vm1, %v986_v51, %v989_v49  ;;  %v2115_v51 = vld [vmem:[#allocation5 + $0x40] sm:$0xff]  }
 0x136   : > { %1802 = vmatpush3.bf16.msra.mxu0 %v2433_v9  ;;  %vm1003_vm7 = vcmp.eq.s32.totalorder %v991_v52, %v2561_v39 }
 0x137   : > { %1790 = vmatpush3.bf16.msra.mxu1 %v2489_v24  ;;  %1803 = vmatprep.subr.bf16.mxu0 %v2437_v10  ;;  %vm1582_vm9 = vmpackc.low %vm1003_vm7, %vm1003_vm7 }
 0x138   : > { %1791 = vmatprep.subr.bf16.mxu1 %v2492_v25 }
 0x139   : > { %v994_v53 = vpop.permute.xlu1 %993 }
 0x13a   : > { %1804 = vmatpush3.bf16.msra.mxu0 %v2446_v13 }
 0x13b   : > { %1792 = vmatpush3.bf16.msra.mxu1 %v2499_v26  ;;  %1805 = vmatprep.subr.bf16.mxu0 %v2449_v14 }
 0x13c   : > { %1821 = vmatprep.subr.bf16.mxu1 %v2419_v5 }
 0x13e   : > { %1806 = vmatpush3.bf16.msra.mxu0 %v2456_v16  ;;  %1573 = vmatmul.mubr.msk.bf16.vlgmr.msra.gmra.mxu1 %vm1572_vm8, %v2261_v46  ;;  %v999_v54 = vpop.permute.xlu1 %998 }
 0x13f   : > { %1822 = vmatpush3.bf16.msra.mxu1 %v2421_v6  ;;  %1807 = vmatprep.subr.bf16.mxu0 %v2460_v17  ;;  %v1000_v62 = vsel %vm264_vm0, %v999_v54, %v994_v53 }
 0x140   : > { %1823 = vmatprep.subr.bf16.mxu1 %v2425_v7  ;;  %1583 = vmatprep.mubr.msk.bf16.mxu1 %vm1582_vm9, %v2261_v46  ;;  %vm1002_vm14 = vcmp.eq.s32.totalorder %v1000_v62, %v2557_v38 }
 0x141   : > { %vm1584_vm2 = vmpackc.low %vm1002_vm14, %vm1002_vm14 }
 0x142   : > { %1808 = vmatpush3.bf16.msra.mxu0 %v2468_v18 }
 0x143   : > { %1824 = vmatpush3.bf16.msra.mxu1 %v2433_v9  ;;  %1809 = vmatprep.subr.bf16.mxu0 %v2471_v19  ;;  %v1056_v55 = vpop.permute.xlu1 %1055 }
 0x144   : > { %1825 = vmatprep.subr.bf16.mxu1 %v2437_v10  ;;  %v1058_v58 = vsel %vm269_vm1, %v1053_v56, %v1056_v55 }
 0x145   : > { %vm1070_vm11 = vcmp.eq.s32.totalorder %v1058_v58, %v2561_v39 }
 0x146   : > { %1810 = vmatpush3.bf16.msra.mxu0 %v2479_v20  ;;  %vm1588_vm13 = vmpackc.low %vm1070_vm11, %vm1070_vm11 }
 0x147   : > { %1826 = vmatpush3.bf16.msra.mxu1 %v2446_v13  ;;  %1811 = vmatprep.subr.bf16.mxu0 %v2482_v21 }
 0x148   : > { %1827 = vmatprep.subr.bf16.mxu1 %v2449_v14  ;;  %v1066_v60 = vpop.permute.xlu1 %1065 }
 0x14a   : > { %1812 = vmatpush3.bf16.msra.mxu0 %v2489_v24 }
 0x14b   : > { %1828 = vmatpush3.bf16.msra.mxu1 %v2456_v16  ;;  %1813 = vmatprep.subr.bf16.mxu0 %v2492_v25 }
 0x14c   : > { %1829 = vmatprep.subr.bf16.mxu1 %v2460_v17 }
 0x14d   : > { %v1120_v63 = vpop.permute.xlu1 %1119 }
 0x14e   : > { %1814 = vmatpush3.bf16.msra.mxu0 %v2499_v26  ;;  %v1125_v0 = vsel %vm269_vm1, %v1120_v63, %v1123_v61 }
 0x14f   : > { %1830 = vmatpush3.bf16.msra.mxu1 %v2468_v18  ;;  %1843 = vmatprep.subr.bf16.mxu0 %v2419_v5  ;;  %vm1137_vm15 = vcmp.eq.s32.totalorder %v1125_v0, %v2561_v39 }
 0x150   : > { %1831 = vmatprep.subr.bf16.mxu1 %v2471_v19  ;;  %vm1594_vm3 = vmpackc.low %vm1137_vm15, %vm1137_vm15 }
 0x151   : > { %1579 = vmatmul.mubr.msk.bf16.vlgmr.msra.gmra.mxu0 %vm1578_vm12, %v2261_v46 }
 0x152   : > { %1844 = vmatpush3.bf16.msra.mxu0 %v2421_v6  ;;  %1589 = vmatprep.mubr.msk.bf16.mxu0 %vm1588_vm13, %v2261_v46  ;;  %v1128_v1 = vpop.permute.xlu1 %1127 }
 0x153   : > { %1832 = vmatpush3.bf16.msra.mxu1 %v2479_v20  ;;  %1845 = vmatprep.subr.bf16.mxu0 %v2425_v7 }
 0x154   : > { %1833 = vmatprep.subr.bf16.mxu1 %v2482_v21 }
 0x156   : > { %1846 = vmatpush3.bf16.msra.mxu0 %v2433_v9 }
 0x157   : > { %1834 = vmatpush3.bf16.msra.mxu1 %v2489_v24  ;;  %1847 = vmatprep.subr.bf16.mxu0 %v2437_v10  ;;  %v1133_v3 = vpop.permute.xlu1 %1132 }
 0x158   : > { %1835 = vmatprep.subr.bf16.mxu1 %v2492_v25 }
 0x15a   : > { %1848 = vmatpush3.bf16.msra.mxu0 %v2446_v13 }
 0x15b   : > { %1836 = vmatpush3.bf16.msra.mxu1 %v2499_v26  ;;  %1849 = vmatprep.subr.bf16.mxu0 %v2449_v14 }
 0x15c   : > { %1865 = vmatprep.subr.bf16.mxu1 %v2419_v5  ;;  %v1190_v4 = vpop.permute.xlu1 %1189 }
 0x15d   : > { %v1192_v12 = vsel %vm269_vm1, %v1187_v11, %v1190_v4 }
 0x15e   : > { %1850 = vmatpush3.bf16.msra.mxu0 %v2456_v16  ;;  %1585 = vmatmul.mubr.msk.bf16.vlgmr.msra.gmra.mxu1 %vm1584_vm2, %v2261_v46  ;;  %vm1204_vm5 = vcmp.eq.s32.totalorder %v1192_v12, %v2561_v39 }
 0x15f   : > { %1866 = vmatpush3.bf16.msra.mxu1 %v2421_v6  ;;  %1851 = vmatprep.subr.bf16.mxu0 %v2460_v17  ;;  %v1067_v6 = vsel %vm264_vm0, %v1066_v60, %v1061_v59  ;;  %vm1600_vm7 = vmpackc.low %vm1204_vm5, %vm1204_vm5 }
 0x160   : > { %1867 = vmatprep.subr.bf16.mxu1 %v2425_v7  ;;  %1595 = vmatprep.mubr.msk.bf16.mxu1 %vm1594_vm3, %v2261_v46  ;;  %vm1069_vm4 = vcmp.eq.s32.totalorder %v1067_v6, %v2557_v38 }
 0x161   : > { %vm1590_vm6 = vmpackc.low %vm1069_vm4, %vm1069_vm4  ;;  %v1200_v23 = vpop.permute.xlu1 %1199 }
 0x162   : > { %1852 = vmatpush3.bf16.msra.mxu0 %v2468_v18  ;;  %v1201_v33 = vsel %vm264_vm0, %v1200_v23, %v1195_v15 }
 0x163   : > { %1868 = vmatpush3.bf16.msra.mxu1 %v2433_v9  ;;  %1853 = vmatprep.subr.bf16.mxu0 %v2471_v19  ;;  %vm1203_vm12 = vcmp.eq.s32.totalorder %v1201_v33, %v2557_v38 }
 0x164   : > { %1869 = vmatprep.subr.bf16.mxu1 %v2437_v10  ;;  %vm1602_vm14 = vmpackc.low %vm1203_vm12, %vm1203_vm12 }
 0x166   : > { %1854 = vmatpush3.bf16.msra.mxu0 %v2479_v20 }
 0x167   : > { %1870 = vmatpush3.bf16.msra.mxu1 %v2446_v13  ;;  %1855 = vmatprep.subr.bf16.mxu0 %v2482_v21  ;;  %v1254_v2 = vpop.permute.xlu1 %1253 }
 0x168   : > { %1871 = vmatprep.subr.bf16.mxu1 %v2449_v14  ;;  %v1259_v27 = vsel %vm269_vm1, %v1254_v2, %v1257_v8 }
 0x169   : > { %vm1271_vm9 = vcmp.eq.s32.totalorder %v1259_v27, %v2561_v39 }
 0x16a   : > { %1856 = vmatpush3.bf16.msra.mxu0 %v2489_v24  ;;  %vm1607_vm11 = vmpackc.low %vm1271_vm9, %vm1271_vm9 }
 0x16b   : > { %1872 = vmatpush3.bf16.msra.mxu1 %v2456_v16  ;;  %1857 = vmatprep.subr.bf16.mxu0 %v2492_v25 }
 0x16c   : > { %1873 = vmatprep.subr.bf16.mxu1 %v2460_v17 }
 0x16e   : > { %1858 = vmatpush3.bf16.msra.mxu0 %v2499_v26 }
 0x16f   : > { %1874 = vmatpush3.bf16.msra.mxu1 %v2468_v18  ;;  %1887 = vmatprep.subr.bf16.mxu0 %v2419_v5  ;;  %v1134_v5 = vsel %vm264_vm0, %v1133_v3, %v1128_v1 }
 0x170   : > { %1875 = vmatprep.subr.bf16.mxu1 %v2471_v19  ;;  %vm1136_vm8 = vcmp.eq.s32.totalorder %v1134_v5, %v2557_v38 }
 0x171   : > { %1591 = vmatmul.mubr.msk.bf16.vlgmr.msra.gmra.mxu0 %vm1590_vm6, %v2261_v46  ;;  %vm1596_vm10 = vmpackc.low %vm1136_vm8, %vm1136_vm8 }
 0x172   : > { %1888 = vmatpush3.bf16.msra.mxu0 %v2101_v22  ;;  %1601 = vmatprep.mubr.msk.bf16.mxu0 %vm1600_vm7, %v2261_v46 }
 0x173   : > { %1876 = vmatpush3.bf16.msra.mxu1 %v2479_v20  ;;  %1889 = vmatprep.subr.bf16.mxu0 %v2425_v7  ;;  %v2102_v7 = vld [vmem:[#allocation5 + $0x78] sm:$0xff]  }
 0x174   : > { %1877 = vmatprep.subr.bf16.mxu1 %v2482_v21 }
 0x176   : > { %1890 = vmatpush3.bf16.msra.mxu0 %v2433_v9  ;;  %v1262_v9 = vpop.permute.xlu1 %1261 }
 0x177   : > { %1878 = vmatpush3.bf16.msra.mxu1 %v2489_v24  ;;  %1891 = vmatprep.subr.bf16.mxu0 %v2437_v10  ;;  %v2103_v10 = vld [vmem:[#allocation5 + $0x70] sm:$0xff]  }
 0x178   : > { %1879 = vmatprep.subr.bf16.mxu1 %v2492_v25 }
 0x17a   : > { %1892 = vmatpush3.bf16.msra.mxu0 %v2446_v13  ;;  %v1267_v28 = vpop.permute.xlu1 %1266 }
 0x17b   : > { %1880 = vmatpush3.bf16.msra.mxu1 %v2499_v26  ;;  %1893 = vmatprep.subr.bf16.mxu0 %v2449_v14 }
 0x17c   : > { %1909 = vmatprep.subr.bf16.mxu1 %v2102_v7 }
 0x17e   : > { %1894 = vmatpush3.bf16.msra.mxu0 %v2456_v16  ;;  %1597 = vmatmul.mubr.msk.bf16.vlgmr.msra.gmra.mxu1 %vm1596_vm10, %v2261_v46  ;;  %v1329_v31 = vpop.permute.xlu1 %1328 }
 0x17f   : > { %1910 = vmatpush3.bf16.msra.mxu1 %v2101_v22  ;;  %1895 = vmatprep.subr.bf16.mxu0 %v2460_v17  ;;  %v1331_v34 = vsel %vm269_vm1, %v1326_v32, %v1329_v31 }
 0x180   : > { %1911 = vmatprep.subr.bf16.mxu1 %v2103_v10  ;;  %1608 = vmatprep.mubr.msk.bf16.mxu1 %vm1607_vm11, %v2261_v46  ;;  %vm1343_vm13 = vcmp.eq.s32.totalorder %v1331_v34, %v2561_v39 }
 0x181   : > { %vm1614_vm15 = vmpackc.low %vm1343_vm13, %vm1343_vm13 }
 0x182   : > { %1896 = vmatpush3.bf16.msra.mxu0 %v2468_v18  ;;  %v1339_v44 = vpop.permute.xlu1 %1338 }
 0x183   : > { %1912 = vmatpush3.bf16.msra.mxu1 %v2104_v29  ;;  %1897 = vmatprep.subr.bf16.mxu0 %v2471_v19  ;;  %v1340_v49 = vsel %vm264_vm0, %v1339_v44, %v1334_v45 }
 0x184   : > { %1913 = vmatprep.subr.bf16.mxu1 %v2105_v30  ;;  %vm1342_vm3 = vcmp.eq.s32.totalorder %v1340_v49, %v2557_v38 }
 0x185   : > { %vm1616_vm4 = vmpackc.low %vm1342_vm3, %vm1342_vm3 }
 0x186   : > { %1898 = vmatpush3.bf16.msra.mxu0 %v2479_v20 }
 0x187   : > { %1914 = vmatpush3.bf16.msra.mxu1 %v2446_v13  ;;  %1899 = vmatprep.subr.bf16.mxu0 %v2482_v21 }
 0x188   : > { %1915 = vmatprep.subr.bf16.mxu1 %v2449_v14 }
 0x18a   : > { %1900 = vmatpush3.bf16.msra.mxu0 %v2489_v24 }
 0x18b   : > { %1916 = vmatpush3.bf16.msra.mxu1 %v2456_v16  ;;  %1901 = vmatprep.subr.bf16.mxu0 %v2492_v25 }
 0x18c   : > { %1917 = vmatprep.subr.bf16.mxu1 %v2460_v17 }
 0x18e   : > { %1902 = vmatpush3.bf16.msra.mxu0 %v2499_v26 }
 0x18f   : > { %1918 = vmatpush3.bf16.msra.mxu1 %v2468_v18  ;;  %1931 = vmatprep.subr.bf16.mxu0 %v2102_v7  ;;  %v1268_v18 = vsel %vm264_vm0, %v1267_v28, %v1262_v9 }
 0x190   : > { %1919 = vmatprep.subr.bf16.mxu1 %v2471_v19  ;;  %vm1270_vm1 = vcmp.eq.s32.totalorder %v1268_v18, %v2557_v38  ;;  %v2106_v19 = vld [vmem:[#allocation5 + $0x28] sm:$0xff]  }
 0x191   : > { %1603 = vmatmul.mubr.msk.bf16.vlgmr.msra.gmra.mxu0 %vm1602_vm14, %v2261_v46  ;;  %v1639_v13 = vpop.f32.mrf.mxu0  ;;  %vm1609_vm2 = vmpackc.low %vm1270_vm1, %vm1270_vm1 }
 0x192   : > { %1932 = vmatpush3.bf16.msra.mxu0 %v2101_v22  ;;  %1615 = vmatprep.mubr.msk.bf16.mxu0 %vm1614_vm15, %v2261_v46 }
 0x193   : > { %v1640_v14 = vpop.f32.mrf.mxu0  ;;  %1920 = vmatpush3.bf16.msra.mxu1 %v2479_v20  ;;  %1933 = vmatprep.subr.bf16.mxu0 %v2103_v10  ;;  %v2107_v20 = vld [vmem:[#allocation5 + $0x60] sm:$0xff]  }
 0x194   : > { %v1641_v16 = vadd.f32 %v1640_v14, %v1639_v13  ;;  %1921 = vmatprep.subr.bf16.mxu1 %v2482_v21  ;;  %v2108_v21 = vld [vmem:[#allocation5 + $0x20] sm:$0xff]  }
 0x195   : > { %v1642_v17 = vpop.f32.mrf.mxu0 }
 0x196   : > { %1934 = vmatpush3.bf16.msra.mxu0 %v2104_v29 }
 0x197   : > { %v1643_v39 = vpop.f32.mrf.mxu0  ;;  %1922 = vmatpush3.bf16.msra.mxu1 %v2489_v24  ;;  %1935 = vmatprep.subr.bf16.mxu0 %v2105_v30 }
 0x198   : > { %1923 = vmatprep.subr.bf16.mxu1 %v2492_v25 }
 0x19a   : > { %1936 = vmatpush3.bf16.msra.mxu0 %v2106_v19 }
 0x19b   : > { %1924 = vmatpush3.bf16.msra.mxu1 %v2499_v26  ;;  %1937 = vmatprep.subr.bf16.mxu0 %v2107_v20 }
 0x19e   : > { %1938 = vmatpush3.bf16.msra.mxu0 %v2108_v21  ;;  %1610 = vmatmul.mubr.msk.bf16.vlgmr.msra.gmra.mxu1 %vm1609_vm2, %v2261_v46  ;;  %v1661_v35 = vpop.f32.mrf.mxu1 }
 0x19f   : > { %1939 = vmatprep.subr.bf16.mxu0 %v2109_v36 }
 0x1a0   : > { %v1662_v24 = vpop.f32.mrf.mxu1 }
 0x1a1   : > { %v1663_v37 = vadd.f32 %v1662_v24, %v1661_v35 }
 0x1a2   : > { %1940 = vmatpush3.bf16.msra.mxu0 %v2110_v40  ;;  %v1664_v41 = vpop.f32.mrf.mxu1 }
 0x1a3   : > { %v514_v25 = vmax.f32 %v1641_v16, %v1663_v37  ;;  %1941 = vmatprep.subr.bf16.mxu0 %v2111_v42 }
 0x1a4   : > { %v1665_v43 = vpop.f32.mrf.mxu1 }
 0x1a6   : > { %1942 = vmatpush3.bf16.msra.mxu0 %v2112_v47 }
 0x1a7   : > { %1943 = vmatprep.subr.bf16.mxu0 %v2113_v48 }
 0x1aa   : > { %1944 = vmatpush3.bf16.msra.mxu0 %v2114_v50 }
 0x1ab   : > { %1945 = vmatprep.subr.bf16.mxu0 %v2115_v51 }
 0x1ae   : > { %1946 = vmatpush3.bf16.msra.mxu0 %v2499_v26 }
 0x1b1   : > { %v1683_v52 = vpop.f32.mrf.mxu0  ;;  %1617 = vmatmul.mubr.msk.bf16.vlgmr.msra.gmra.mxu0 %vm1616_vm4, %v2261_v46 }
 0x1b3   : > { %v1684_v53 = vpop.f32.mrf.mxu0 }
 0x1b4   : > { %v1685_v54 = vadd.f32 %v1684_v53, %v1683_v52 }
 0x1b5   : > { %v1686_v55 = vpop.f32.mrf.mxu0 }
 0x1b6   : > { %v581_v56 = vmax.f32 %v514_v25, %v1685_v54  ;;  %v1606_v55 = vld [vmem:[%s2942_s3] ss:$0 sm:$0xff] }
 0x1b7   : > { %v1687_v57 = vpop.f32.mrf.mxu0 }
 0x1be   : > { %v1705_v58 = vpop.f32.mrf.mxu1 }
 0x1c0   : > { %v1706_v59 = vpop.f32.mrf.mxu1 }
 0x1c1   : > { %v1707_v60 = vadd.f32 %v1706_v59, %v1705_v58 }
 0x1c2   : > { %v1708_v61 = vpop.f32.mrf.mxu1 }
 0x1c3   : > { %v648_v62 = vmax.f32 %v581_v56, %v1707_v60  ;;  %v1613_v61 = vld [vmem:[%s2942_s3 + $0x1] ss:$0 sm:$0xff] }
 0x1c4   : > { %v1709_v63 = vpop.f32.mrf.mxu1 }
 0x1d1   : > { %v1727_v38 = vpop.f32.mrf.mxu0 }
 0x1d3   : > { %v1728_v0 = vpop.f32.mrf.mxu0 }
 0x1d4   : > { %v1729_v1 = vadd.f32 %v1728_v0, %v1727_v38 }
 0x1d5   : > { %v1730_v3 = vpop.f32.mrf.mxu0 }
 0x1d6   : > { %v715_v4 = vmax.f32 %v648_v62, %v1729_v1 }
 0x1d7   : > { %v1731_v26 = vpop.f32.mrf.mxu0 }
 0x1de   : > { %v1749_v11 = vpop.f32.mrf.mxu1 }
 0x1e0   : > { %v1750_v6 = vpop.f32.mrf.mxu1 }
 0x1e1   : > { %v1751_v46 = vadd.f32 %v1750_v6, %v1749_v11 }
 0x1e2   : > { %v1752_v12 = vpop.f32.mrf.mxu1 }
 0x1e3   : > { %v782_v15 = vmax.f32 %v715_v4, %v1751_v46  ;;  %v1618_v4 = vld [vmem:[%s2941_s2] ss:$0 sm:$0xff] }
 0x1e4   : > { %v1753_v22 = vpop.f32.mrf.mxu1 }
 0x1f1   : > { %v1771_v23 = vpop.f32.mrf.mxu0 }
 0x1f3   : > { %v1772_v8 = vpop.f32.mrf.mxu0 }
 0x1f4   : > { %v1773_v5 = vadd.f32 %v1772_v8, %v1771_v23 }
 0x1f5   : > { %v1774_v2 = vpop.f32.mrf.mxu0 }
 0x1f6   : > { %v849_v27 = vmax.f32 %v782_v15, %v1773_v5 }
 0x1f7   : > { %v1775_v7 = vpop.f32.mrf.mxu0 }
 0x1fe   : > { %v1793_v9 = vpop.f32.mrf.mxu1 }
 0x200   : > { %v1794_v10 = vpop.f32.mrf.mxu1 }
 0x201   : > { %v1795_v28 = vadd.f32 %v1794_v10, %v1793_v9 }
 0x202   : > { %v1796_v29 = vpop.f32.mrf.mxu1 }
 0x203   : > { %v916_v30 = vmax.f32 %v849_v27, %v1795_v28 }
 0x204   : > { %v1797_v31 = vpop.f32.mrf.mxu1 }
 0x211   : > { %v1815_v32 = vpop.f32.mrf.mxu0 }
 0x213   : > { %v1816_v33 = vpop.f32.mrf.mxu0 }
 0x214   : > { %v1817_v34 = vadd.f32 %v1816_v33, %v1815_v32 }
 0x215   : > { %v1818_v13 = vpop.f32.mrf.mxu0 }
 0x216   : > { %v983_v14 = vmax.f32 %v916_v30, %v1817_v34 }
 0x217   : > { %v1819_v16 = vpop.f32.mrf.mxu0 }
 0x21e   : > { %v1837_v17 = vpop.f32.mrf.mxu1 }
 0x220   : > { %v1838_v18 = vpop.f32.mrf.mxu1 }
 0x221   : > { %v1839_v39 = vadd.f32 %v1838_v18, %v1837_v17 }
 0x222   : > { %v1840_v19 = vpop.f32.mrf.mxu1 }
 0x223   : > { %v1050_v20 = vmax.f32 %v983_v14, %v1839_v39 }
 0x224   : > { %v1841_v21 = vpop.f32.mrf.mxu1 }
 0x231   : > { %v1859_v35 = vpop.f32.mrf.mxu0 }
 0x233   : > { %v1860_v36 = vpop.f32.mrf.mxu0 }
 0x234   : > { %v1861_v52 = vadd.f32 %v1860_v36, %v1859_v35 }
 0x235   : > { %v1862_v24 = vpop.f32.mrf.mxu0 }
 0x236   : > { %v1117_v56 = vmax.f32 %v1050_v20, %v1861_v52 }
 0x237   : > { %v1863_v37 = vpop.f32.mrf.mxu0 }
 0x23e   : > { %v1881_v40 = vpop.f32.mrf.mxu1 }
 0x240   : > { %v1882_v41 = vpop.f32.mrf.mxu1 }
 0x241   : > { %v1883_v53 = vadd.f32 %v1882_v41, %v1881_v40 }
 0x242   : > { %v1884_v25 = vpop.f32.mrf.mxu1 }
 0x243   : > { %v1184_v59 = vmax.f32 %v1117_v56, %v1883_v53 }
 0x244   : > { %v1885_v42 = vpop.f32.mrf.mxu1 }
 0x251   : > { %v1903_v43 = vpop.f32.mrf.mxu0 }
 0x253   : > { %v1904_v44 = vpop.f32.mrf.mxu0 }
 0x254   : > { %v1905_v57 = vadd.f32 %v1904_v44, %v1903_v43 }
 0x255   : > { %v1906_v45 = vpop.f32.mrf.mxu0 }
 0x256   : > { %v1251_v63 = vmax.f32 %v1184_v59, %v1905_v57 }
 0x257   : > { %v1907_v47 = vpop.f32.mrf.mxu0 }
 0x25e   : > { %v1925_v48 = vpop.f32.mrf.mxu1 }
 0x260   : > { %v1926_v49 = vpop.f32.mrf.mxu1 }
 0x261   : > { %v1927_v54 = vadd.f32 %v1926_v49, %v1925_v48 }
 0x262   : > { %v1928_v50 = vpop.f32.mrf.mxu1 }
 0x263   : > { %v1318_v60 = vadd.f32 %v1927_v54, %v1606_v55 }
 0x264   : > { %v1929_v51 = vpop.f32.mrf.mxu1 }
 0x265   : > { %v1323_v1 = vmax.f32 %v1251_v63, %v1318_v60 }
 0x271   : > { %v1947_v58 = vpop.f32.mrf.mxu0 }
 0x273   : > { %v1948_v62 = vpop.f32.mrf.mxu0 }
 0x274   : > { %v1949_v38 = vadd.f32 %v1948_v62, %v1947_v58 }
 0x275   : > { %v1950_v0 = vpop.f32.mrf.mxu0 }
 0x276   : > { %v1390_v3 = vadd.f32 %v1949_v38, %v1613_v61 }
 0x277   : > { %v1951_v26 = vpop.f32.mrf.mxu0 }
 0x278   : > { %v1395_v11 = vmax.f32 %v1323_v1, %v1390_v3 }
 0x27a   : > { %v1403_v6 = vadd.f32 %v1618_v4, %v1395_v11 }
 0x27c   : > { %v1404_v46 = vmax.f32 %v1403_v6, 0.0 }
 0x27e   : > { %1405 = vst [vmem:[%s227_s8] sm:$0xff] %v1404_v46 }
 0x27f   : > { %2183 = shalt.err (!%p2180_p0)
}
 0x280   : > { %s2184_s30 = scalar_lea.hbm %s1418_s14, 128  ;;  %s2188_s24 = scalar_lea.hbm %s2943_s4, 256 }
 0x281   : > { %p2185_p5 = scmp.ne.s32.totalorder %s1418_s14, %s2184_s30  ;;  %p2189_p1 = scmp.lt.s32.totalorder %s1418_s14, %s2943_s4 }
 0x282   : > { %p2190_p4 = scmp.lt.s32.totalorder %s2188_s24, %s2184_s30 }
 0x283   : > { %p2186_p9 = pnand %p2185_p5, %p2959_p3 }
 0x284   : > { %p2191_p6 = por %p2190_p4, %p2189_p1 }
 0x285   : > { %p2187_p12 = pneg %p2186_p9 }
 0x287   : > { %p2192_p8 = pnand %p2191_p6, %p2187_p12 }
 0x289   : > { %2195 = shalt.err (!%p2192_p8)
}
 0x28a   : > { %1959 = dma.vmem_to_hbm [thread:$0]  (%p2959_p3), %s1421_s12, 128, %s1418_s14, %s1407_s20  }
 0x28b PF: > { %s1432_s29 = sand.u32 1, %s2226_s15   ;;  %p2960_p11 = scmp.ne.s32.totalorder %s2949_s22, 0 }
 0x28c   : > { %p2961_p7 = scmp.ge.s32.totalorder %s2238_s18, 2  ;;  %s1433_s7 = scalar_lea.sflag [#allocation4], %s1432_s29 }
 0x28e   : > { %p1970_p10 = pnand %p2961_p7, %p2960_p11 }
 0x290   : > { %p1971_p2 = pneg %p1970_p10 }
 0x292   : > { %2221 = dma.done.wait (%p1971_p2), %s1433_s7, 128  }
 0x293   : > { %2223 = vsyncadd (%p1971_p2), %s1433_s7, 4294967168  ;;  %p18_p13 = scmp.ge.s32.totalorder %s2343_s27, 4   ;;  %s2962_s15 = smov %s2230_s16 }
 0x294   : > { %s2963_s16 = smov %s2234_s17  ;;  %s2964_s17 = smov %s2360_s9 }
 0x295   : > { %s2965_s18 = smov %s2343_s27  ;;  %20 = sbr.rel (!%p18_p13) target bundleno = 6 (0x6), region = 85 }
 0x29a   :  { %1438 = vsyncpa [#allocation3], 1 }
 0x29b   :  { %1440 = vsyncpa [#allocation3 + $0x1], 1 }
 0x29c   :  { %1441 = vsyncpa [#allocation6], 1 }
 0x29d   :  { %1442 = vsyncpa [#allocation4], 1 }
 0x29e   :  { %1444 = vsyncpa [#allocation4 + $0x1], 1 }

</bundles_post_ra>
